<compile_context>
chip_gen: v7x
topology: tpu7x:2x2x1
jax: 0.10.0
libtpu: 0.0.40
codegen_flags: <defaults>
</compile_context>

<pallas_src>
import functools

import jax
import jax.numpy as jnp
from jax import lax
from jax.experimental import pallas as pl
from jax.experimental.pallas import tpu as pltpu


LEAKY_SLOPE = 0.2


def _leaky(x, slope=LEAKY_SLOPE):
    return jnp.where(x > 0, x, slope * x)


# ----------------------------------------------------------------------------
# Fused 3-block kernel: for one batch sample, keep the (C, Lp) activation
# resident and apply   x += conv2(leaky(conv1(leaky(x), dil=d)), dil=1)
# for each block. Every conv zero-pads its own post-activation input.
# ----------------------------------------------------------------------------
def _stack_kernel(x_ref, w_ref, o_ref, *, K, dilations, L_valid, slope, cdt):
    # x_ref : (1, C, Lp) f32   input sample (Lp = L rounded up to 128)
    # w_ref : (nb*2*K, C, C)   bf16 per-tap weight matrices, VMEM-resident
    # o_ref : (1, C, Lp) f32   output sample
    _, C, Lp = x_ref.shape
    x = x_ref[0]                                           # (C, Lp) f32

    lane_padded = Lp != L_valid
    if lane_padded:
        col = lax.broadcasted_iota(jnp.int32, (C, Lp), 1)  # hoisted once
        in_seq = col < L_valid

    def activate(v):
        a = _leaky(v, slope)
        if lane_padded:
            # Columns >= L_valid must act as the zero padding of the real
            # sequence for every conv in the stack.
            a = jnp.where(in_seq, a, 0.0)
        return a.astype(cdt)

    def conv_same(a, w_base, d):
        # "same" conv with dilation d: explicit zero halo of h columns per
        # side, then K statically shifted (C,C)@(C,Lp) MXU dots, f32 accum.
        h = ((K - 1) * d) // 2
        if h > 0:
            z = jnp.zeros((C, h), a.dtype)
            ap = jnp.concatenate([z, a, z], axis=1)        # (C, Lp + 2h)
        else:
            ap = a
        acc = None
        for k in range(K):
            ak = ap[:, k * d:k * d + Lp]                   # static lane shift
            t = jnp.dot(w_ref[w_base + k], ak,
                        preferred_element_type=jnp.float32)
            acc = t if acc is None else acc + t
        return acc                                         # (C, Lp) f32

    for i, d in enumerate(dilations):
        y = conv_same(activate(x), (2 * i) * K, d)         # dilated conv
        y = conv_same(activate(y), (2 * i + 1) * K, 1)     # dilation-1 conv
        x = x + y                                          # residual in f32

    o_ref[0] = x.astype(o_ref.dtype)


# ----------------------------------------------------------------------------
# Wrapper: one pallas_call for the whole stack, grid over the batch.
# ----------------------------------------------------------------------------
def residual_stack_forward(weights, x, *, dilations=(1, 3, 9),
                           compute_dtype=jnp.bfloat16):
    B, C, L = x.shape
    nb = len(weights)
    assert nb == len(dilations)
    K = weights[0][0].shape[-1]
    for (w1, w2) in weights:
        assert w1.shape == (C, C, K) and w2.shape == (C, C, K)
    for d in dilations:
        assert ((K - 1) * d) % 2 == 0, "odd effective kernel span unsupported"

    # (Cout, Cin, K) -> (K, Cout, Cin) per conv; all convs stacked into one
    # resident bf16 slab indexed [conv_idx*K + tap].
    w_stack = jnp.concatenate(
        [jnp.transpose(w, (2, 0, 1)) for pair in weights for w in pair],
        axis=0).astype(compute_dtype)                      # (nb*2*K, C, C)

    # Lane-align L so output stores are dense 128-lane stores; the kernel
    # masks columns >= L so padding never changes the valid outputs.
    Lp = L if L % 128 == 0 else ((L + 127) // 128) * 128
    xp = x if Lp == L else jnp.pad(x, ((0, 0), (0, 0), (0, Lp - L)))

    kernel = functools.partial(
        _stack_kernel, K=K, dilations=tuple(dilations), L_valid=L,
        slope=LEAKY_SLOPE, cdt=compute_dtype)

    out = pl.pallas_call(
        kernel,
        grid=(B,),
        in_specs=[
            # One whole (lane-padded) sample per grid step.
            pl.BlockSpec((1, C, Lp), lambda b: (b, 0, 0)),
            # Weights: constant index_map -> fetched once, stay resident.
            pl.BlockSpec((nb * 2 * K, C, C), lambda b: (0, 0, 0)),
        ],
        out_specs=pl.BlockSpec((1, C, Lp), lambda b: (b, 0, 0)),
        out_shape=jax.ShapeDtypeStruct((B, C, Lp), x.dtype),
        compiler_params=pltpu.CompilerParams(
            dimension_semantics=("parallel",)),
    )(xp, w_stack)

    return out if Lp == L else out[:, :, :L]


# ----------------------------------------------------------------------------
# Pure-JAX reference (same bf16 matmul inputs / f32 accumulation path).
# ----------------------------------------------------------------------------
def residual_stack_ref(weights, x, *, dilations=(1, 3, 9),
                       compute_dtype=jnp.bfloat16):
    for (w1, w2), d in zip(weights, dilations):
        y = x
        for w, dd in ((w1, d), (w2, 1)):
            K = w.shape[-1]
            pad = ((K - 1) * dd) // 2
            a = _leaky(y).astype(compute_dtype)
            y = lax.conv_general_dilated(
                a, w.astype(compute_dtype),
                window_strides=(1,), padding=[(pad, pad)],
                rhs_dilation=(dd,),
                dimension_numbers=("NCH", "OIH", "NCH"),
                preferred_element_type=jnp.float32)
        x = x + y
    return x


# ----------------------------------------------------------------------------
# Parameter construction (PyTorch-default-like uniform init, bias=False).
# ----------------------------------------------------------------------------
def init_residual_stack_params(key, dim, kernel_size, n_blocks=3):
    keys = jax.random.split(key, 2 * n_blocks)
    bound = 1.0 / float(dim * kernel_size) ** 0.5
    weights = []
    for i in range(n_blocks):
        w1 = jax.random.uniform(keys[2 * i], (dim, dim, kernel_size),
                                jnp.float32, -bound, bound)
        w2 = jax.random.uniform(keys[2 * i + 1], (dim, dim, kernel_size),
                                jnp.float32, -bound, bound)
        weights.append((w1, w2))
    return weights


# ----------------------------------------------------------------------------
if __name__ == "__main__":
    key = jax.random.PRNGKey(0)
    kx, kp, kx2, kp2 = jax.random.split(key, 4)

    fwd = jax.jit(residual_stack_forward)

    # Config 1: dim=32, K=3, B=2, L=256 (lane-aligned, no wrapper padding).
    dim, K, B, L = 32, 3, 2, 256
    x = jax.random.normal(kx, (B, dim, L), jnp.float32)
    weights = init_residual_stack_params(kp, dim, K)
    out = fwd(weights, x)
    jax.block_until_ready(out)
    assert out.shape == (B, dim, L)
    ref = residual_stack_ref(weights, x)
    assert jnp.allclose(out, ref, atol=1e-2, rtol=1e-2), (
        float(jnp.max(jnp.abs(out - ref))))

    # Config 2: dim=16, K=5, B=2, L=64 (exercises lane padding + masking).
    dim2, K2, B2, L2 = 16, 5, 2, 64
    x2 = jax.random.normal(kx2, (B2, dim2, L2), jnp.float32)
    weights2 = init_residual_stack_params(kp2, dim2, K2)
    out2 = fwd(weights2, x2)
    jax.block_until_ready(out2)
    assert out2.shape == (B2, dim2, L2)
    ref2 = residual_stack_ref(weights2, x2)
    assert jnp.allclose(out2, ref2, atol=1e-2, rtol=1e-2), (
        float(jnp.max(jnp.abs(out2 - ref2))))

    print("KERNEL_OK")
</pallas_src>

<mosaic_0001>
module attributes {stable_mosaic.version = 11 : i64} {
  func.func @_stack_kernel(%arg0: i32, %arg1: memref<1x32x256xf32, #tpu.memory_space<vmem>>, %arg2: memref<18x32x32xbf16, #tpu.memory_space<vmem>>, %arg3: memref<1x32x256xf32, #tpu.memory_space<vmem>>) attributes {dimension_semantics = [#tpu.dimension_semantics<parallel>], iteration_bounds = array<i64: 2>, scalar_prefetch = 0 : i64, scratch_operands = 0 : i64, tpu.core_type = #tpu.core_type<tc>, window_params = [{transform_indices = @transform_0, window_bounds = array<i64: 1, 32, 256>}, {pipeline_mode = #tpu.pipeline_mode<synchronous>, transform_indices = @transform_1, window_bounds = array<i64: 18, 32, 32>}, {transform_indices = @transform_2, window_bounds = array<i64: 1, 32, 256>}]} {
    %c0 = arith.constant 0 : index
    %c0_0 = arith.constant 0 : index
    %c0_1 = arith.constant 0 : index
    %0 = vector.load %arg1[%c0, %c0_0, %c0_1] : memref<1x32x256xf32, #tpu.memory_space<vmem>>, vector<1x32x256xf32>
    %1 = vector.shape_cast %0 : vector<1x32x256xf32> to vector<32x256xf32>
    %cst = arith.constant 0.000000e+00 : f32
    %2 = vector.broadcast %cst : f32 to vector<32x256xf32>
    %3 = arith.cmpf ogt, %1, %2 : vector<32x256xf32>
    %cst_2 = arith.constant 2.000000e-01 : f32
    %4 = vector.broadcast %cst_2 : f32 to vector<32x256xf32>
    %5 = arith.mulf %4, %1 : vector<32x256xf32>
    %6 = arith.select %3, %1, %5 : vector<32x256xi1>, vector<32x256xf32>
    %7 = arith.truncf %6 : vector<32x256xf32> to vector<32x256xbf16>
    %cst_3 = arith.constant 0.000000e+00 : bf16
    %8 = vector.broadcast %cst_3 : bf16 to vector<32x1xbf16>
    %9 = tpu.concatenate %8, %7, %8 in 1 : vector<32x1xbf16>, vector<32x256xbf16>, vector<32x1xbf16> -> vector<32x258xbf16>
    %10 = vector.extract_strided_slice %9 {offsets = [0, 0], sizes = [32, 256], strides = [1, 1]} : vector<32x258xbf16> to vector<32x256xbf16>
    %c0_4 = arith.constant 0 : index
    %c0_5 = arith.constant 0 : index
    %c0_6 = arith.constant 0 : index
    %11 = vector.load %arg2[%c0_4, %c0_5, %c0_6] : memref<18x32x32xbf16, #tpu.memory_space<vmem>>, vector<1x32x32xbf16>
    %12 = vector.shape_cast %11 : vector<1x32x32xbf16> to vector<32x32xbf16>
    %cst_7 = arith.constant dense<0.000000e+00> : vector<32x256xf32>
    %13 = tpu.matmul %12, %10, %cst_7 {dimension_numbers = #tpu.dot_dimension_numbers<[1], [0], [0], [1], [0, 0, 1, 1], [], []>} : vector<32x32xbf16>, vector<32x256xbf16>, vector<32x256xf32> -> vector<32x256xf32>
    %14 = vector.extract_strided_slice %9 {offsets = [0, 1], sizes = [32, 256], strides = [1, 1]} : vector<32x258xbf16> to vector<32x256xbf16>
    %c1 = arith.constant 1 : index
    %c0_8 = arith.constant 0 : index
    %c0_9 = arith.constant 0 : index
    %15 = vector.load %arg2[%c1, %c0_8, %c0_9] : memref<18x32x32xbf16, #tpu.memory_space<vmem>>, vector<1x32x32xbf16>
    %16 = vector.shape_cast %15 : vector<1x32x32xbf16> to vector<32x32xbf16>
    %cst_10 = arith.constant dense<0.000000e+00> : vector<32x256xf32>
    %17 = tpu.matmul %16, %14, %cst_10 {dimension_numbers = #tpu.dot_dimension_numbers<[1], [0], [0], [1], [0, 0, 1, 1], [], []>} : vector<32x32xbf16>, vector<32x256xbf16>, vector<32x256xf32> -> vector<32x256xf32>
    %18 = arith.addf %13, %17 : vector<32x256xf32>
    %19 = vector.extract_strided_slice %9 {offsets = [0, 2], sizes = [32, 256], strides = [1, 1]} : vector<32x258xbf16> to vector<32x256xbf16>
    %c2 = arith.constant 2 : index
    %c0_11 = arith.constant 0 : index
    %c0_12 = arith.constant 0 : index
    %20 = vector.load %arg2[%c2, %c0_11, %c0_12] : memref<18x32x32xbf16, #tpu.memory_space<vmem>>, vector<1x32x32xbf16>
    %21 = vector.shape_cast %20 : vector<1x32x32xbf16> to vector<32x32xbf16>
    %cst_13 = arith.constant dense<0.000000e+00> : vector<32x256xf32>
    %22 = tpu.matmul %21, %19, %cst_13 {dimension_numbers = #tpu.dot_dimension_numbers<[1], [0], [0], [1], [0, 0, 1, 1], [], []>} : vector<32x32xbf16>, vector<32x256xbf16>, vector<32x256xf32> -> vector<32x256xf32>
    %23 = arith.addf %18, %22 : vector<32x256xf32>
    %cst_14 = arith.constant 0.000000e+00 : f32
    %24 = vector.broadcast %cst_14 : f32 to vector<32x256xf32>
    %25 = arith.cmpf ogt, %23, %24 : vector<32x256xf32>
    %cst_15 = arith.constant 2.000000e-01 : f32
    %26 = vector.broadcast %cst_15 : f32 to vector<32x256xf32>
    %27 = arith.mulf %26, %23 : vector<32x256xf32>
    %28 = arith.select %25, %23, %27 : vector<32x256xi1>, vector<32x256xf32>
    %29 = arith.truncf %28 : vector<32x256xf32> to vector<32x256xbf16>
    %cst_16 = arith.constant 0.000000e+00 : bf16
    %30 = vector.broadcast %cst_16 : bf16 to vector<32x1xbf16>
    %31 = tpu.concatenate %30, %29, %30 in 1 : vector<32x1xbf16>, vector<32x256xbf16>, vector<32x1xbf16> -> vector<32x258xbf16>
    %32 = vector.extract_strided_slice %31 {offsets = [0, 0], sizes = [32, 256], strides = [1, 1]} : vector<32x258xbf16> to vector<32x256xbf16>
    %c3 = arith.constant 3 : index
    %c0_17 = arith.constant 0 : index
    %c0_18 = arith.constant 0 : index
    %33 = vector.load %arg2[%c3, %c0_17, %c0_18] : memref<18x32x32xbf16, #tpu.memory_space<vmem>>, vector<1x32x32xbf16>
    %34 = vector.shape_cast %33 : vector<1x32x32xbf16> to vector<32x32xbf16>
    %cst_19 = arith.constant dense<0.000000e+00> : vector<32x256xf32>
    %35 = tpu.matmul %34, %32, %cst_19 {dimension_numbers = #tpu.dot_dimension_numbers<[1], [0], [0], [1], [0, 0, 1, 1], [], []>} : vector<32x32xbf16>, vector<32x256xbf16>, vector<32x256xf32> -> vector<32x256xf32>
    %36 = vector.extract_strided_slice %31 {offsets = [0, 1], sizes = [32, 256], strides = [1, 1]} : vector<32x258xbf16> to vector<32x256xbf16>
    %c4 = arith.constant 4 : index
    %c0_20 = arith.constant 0 : index
    %c0_21 = arith.constant 0 : index
    %37 = vector.load %arg2[%c4, %c0_20, %c0_21] : memref<18x32x32xbf16, #tpu.memory_space<vmem>>, vector<1x32x32xbf16>
    %38 = vector.shape_cast %37 : vector<1x32x32xbf16> to vector<32x32xbf16>
    %cst_22 = arith.constant dense<0.000000e+00> : vector<32x256xf32>
    %39 = tpu.matmul %38, %36, %cst_22 {dimension_numbers = #tpu.dot_dimension_numbers<[1], [0], [0], [1], [0, 0, 1, 1], [], []>} : vector<32x32xbf16>, vector<32x256xbf16>, vector<32x256xf32> -> vector<32x256xf32>
    %40 = arith.addf %35, %39 : vector<32x256xf32>
    %41 = vector.extract_strided_slice %31 {offsets = [0, 2], sizes = [32, 256], strides = [1, 1]} : vector<32x258xbf16> to vector<32x256xbf16>
    %c5 = arith.constant 5 : index
    %c0_23 = arith.constant 0 : index
    %c0_24 = arith.constant 0 : index
    %42 = vector.load %arg2[%c5, %c0_23, %c0_24] : memref<18x32x32xbf16, #tpu.memory_space<vmem>>, vector<1x32x32xbf16>
    %43 = vector.shape_cast %42 : vector<1x32x32xbf16> to vector<32x32xbf16>
    %cst_25 = arith.constant dense<0.000000e+00> : vector<32x256xf32>
    %44 = tpu.matmul %43, %41, %cst_25 {dimension_numbers = #tpu.dot_dimension_numbers<[1], [0], [0], [1], [0, 0, 1, 1], [], []>} : vector<32x32xbf16>, vector<32x256xbf16>, vector<32x256xf32> -> vector<32x256xf32>
    %45 = arith.addf %40, %44 : vector<32x256xf32>
    %46 = arith.addf %1, %45 : vector<32x256xf32>
    %cst_26 = arith.constant 0.000000e+00 : f32
    %47 = vector.broadcast %cst_26 : f32 to vector<32x256xf32>
    %48 = arith.cmpf ogt, %46, %47 : vector<32x256xf32>
    %cst_27 = arith.constant 2.000000e-01 : f32
    %49 = vector.broadcast %cst_27 : f32 to vector<32x256xf32>
    %50 = arith.mulf %49, %46 : vector<32x256xf32>
    %51 = arith.select %48, %46, %50 : vector<32x256xi1>, vector<32x256xf32>
    %52 = arith.truncf %51 : vector<32x256xf32> to vector<32x256xbf16>
    %cst_28 = arith.constant 0.000000e+00 : bf16
    %53 = vector.broadcast %cst_28 : bf16 to vector<32x3xbf16>
    %54 = tpu.concatenate %53, %52, %53 in 1 : vector<32x3xbf16>, vector<32x256xbf16>, vector<32x3xbf16> -> vector<32x262xbf16>
    %55 = vector.extract_strided_slice %54 {offsets = [0, 0], sizes = [32, 256], strides = [1, 1]} : vector<32x262xbf16> to vector<32x256xbf16>
    %c6 = arith.constant 6 : index
    %c0_29 = arith.constant 0 : index
    %c0_30 = arith.constant 0 : index
    %56 = vector.load %arg2[%c6, %c0_29, %c0_30] : memref<18x32x32xbf16, #tpu.memory_space<vmem>>, vector<1x32x32xbf16>
    %57 = vector.shape_cast %56 : vector<1x32x32xbf16> to vector<32x32xbf16>
    %cst_31 = arith.constant dense<0.000000e+00> : vector<32x256xf32>
    %58 = tpu.matmul %57, %55, %cst_31 {dimension_numbers = #tpu.dot_dimension_numbers<[1], [0], [0], [1], [0, 0, 1, 1], [], []>} : vector<32x32xbf16>, vector<32x256xbf16>, vector<32x256xf32> -> vector<32x256xf32>
    %59 = vector.extract_strided_slice %54 {offsets = [0, 3], sizes = [32, 256], strides = [1, 1]} : vector<32x262xbf16> to vector<32x256xbf16>
    %c7 = arith.constant 7 : index
    %c0_32 = arith.constant 0 : index
    %c0_33 = arith.constant 0 : index
    %60 = vector.load %arg2[%c7, %c0_32, %c0_33] : memref<18x32x32xbf16, #tpu.memory_space<vmem>>, vector<1x32x32xbf16>
    %61 = vector.shape_cast %60 : vector<1x32x32xbf16> to vector<32x32xbf16>
    %cst_34 = arith.constant dense<0.000000e+00> : vector<32x256xf32>
    %62 = tpu.matmul %61, %59, %cst_34 {dimension_numbers = #tpu.dot_dimension_numbers<[1], [0], [0], [1], [0, 0, 1, 1], [], []>} : vector<32x32xbf16>, vector<32x256xbf16>, vector<32x256xf32> -> vector<32x256xf32>
    %63 = arith.addf %58, %62 : vector<32x256xf32>
    %64 = vector.extract_strided_slice %54 {offsets = [0, 6], sizes = [32, 256], strides = [1, 1]} : vector<32x262xbf16> to vector<32x256xbf16>
    %c8 = arith.constant 8 : index
    %c0_35 = arith.constant 0 : index
    %c0_36 = arith.constant 0 : index
    %65 = vector.load %arg2[%c8, %c0_35, %c0_36] : memref<18x32x32xbf16, #tpu.memory_space<vmem>>, vector<1x32x32xbf16>
    %66 = vector.shape_cast %65 : vector<1x32x32xbf16> to vector<32x32xbf16>
    %cst_37 = arith.constant dense<0.000000e+00> : vector<32x256xf32>
    %67 = tpu.matmul %66, %64, %cst_37 {dimension_numbers = #tpu.dot_dimension_numbers<[1], [0], [0], [1], [0, 0, 1, 1], [], []>} : vector<32x32xbf16>, vector<32x256xbf16>, vector<32x256xf32> -> vector<32x256xf32>
    %68 = arith.addf %63, %67 : vector<32x256xf32>
    %cst_38 = arith.constant 0.000000e+00 : f32
    %69 = vector.broadcast %cst_38 : f32 to vector<32x256xf32>
    %70 = arith.cmpf ogt, %68, %69 : vector<32x256xf32>
    %cst_39 = arith.constant 2.000000e-01 : f32
    %71 = vector.broadcast %cst_39 : f32 to vector<32x256xf32>
    %72 = arith.mulf %71, %68 : vector<32x256xf32>
    %73 = arith.select %70, %68, %72 : vector<32x256xi1>, vector<32x256xf32>
    %74 = arith.truncf %73 : vector<32x256xf32> to vector<32x256xbf16>
    %cst_40 = arith.constant 0.000000e+00 : bf16
    %75 = vector.broadcast %cst_40 : bf16 to vector<32x1xbf16>
    %76 = tpu.concatenate %75, %74, %75 in 1 : vector<32x1xbf16>, vector<32x256xbf16>, vector<32x1xbf16> -> vector<32x258xbf16>
    %77 = vector.extract_strided_slice %76 {offsets = [0, 0], sizes = [32, 256], strides = [1, 1]} : vector<32x258xbf16> to vector<32x256xbf16>
    %c9 = arith.constant 9 : index
    %c0_41 = arith.constant 0 : index
    %c0_42 = arith.constant 0 : index
    %78 = vector.load %arg2[%c9, %c0_41, %c0_42] : memref<18x32x32xbf16, #tpu.memory_space<vmem>>, vector<1x32x32xbf16>
    %79 = vector.shape_cast %78 : vector<1x32x32xbf16> to vector<32x32xbf16>
    %cst_43 = arith.constant dense<0.000000e+00> : vector<32x256xf32>
    %80 = tpu.matmul %79, %77, %cst_43 {dimension_numbers = #tpu.dot_dimension_numbers<[1], [0], [0], [1], [0, 0, 1, 1], [], []>} : vector<32x32xbf16>, vector<32x256xbf16>, vector<32x256xf32> -> vector<32x256xf32>
    %81 = vector.extract_strided_slice %76 {offsets = [0, 1], sizes = [32, 256], strides = [1, 1]} : vector<32x258xbf16> to vector<32x256xbf16>
    %c10 = arith.constant 10 : index
    %c0_44 = arith.constant 0 : index
    %c0_45 = arith.constant 0 : index
    %82 = vector.load %arg2[%c10, %c0_44, %c0_45] : memref<18x32x32xbf16, #tpu.memory_space<vmem>>, vector<1x32x32xbf16>
    %83 = vector.shape_cast %82 : vector<1x32x32xbf16> to vector<32x32xbf16>
    %cst_46 = arith.constant dense<0.000000e+00> : vector<32x256xf32>
    %84 = tpu.matmul %83, %81, %cst_46 {dimension_numbers = #tpu.dot_dimension_numbers<[1], [0], [0], [1], [0, 0, 1, 1], [], []>} : vector<32x32xbf16>, vector<32x256xbf16>, vector<32x256xf32> -> vector<32x256xf32>
    %85 = arith.addf %80, %84 : vector<32x256xf32>
    %86 = vector.extract_strided_slice %76 {offsets = [0, 2], sizes = [32, 256], strides = [1, 1]} : vector<32x258xbf16> to vector<32x256xbf16>
    %c11 = arith.constant 11 : index
    %c0_47 = arith.constant 0 : index
    %c0_48 = arith.constant 0 : index
    %87 = vector.load %arg2[%c11, %c0_47, %c0_48] : memref<18x32x32xbf16, #tpu.memory_space<vmem>>, vector<1x32x32xbf16>
    %88 = vector.shape_cast %87 : vector<1x32x32xbf16> to vector<32x32xbf16>
    %cst_49 = arith.constant dense<0.000000e+00> : vector<32x256xf32>
    %89 = tpu.matmul %88, %86, %cst_49 {dimension_numbers = #tpu.dot_dimension_numbers<[1], [0], [0], [1], [0, 0, 1, 1], [], []>} : vector<32x32xbf16>, vector<32x256xbf16>, vector<32x256xf32> -> vector<32x256xf32>
    %90 = arith.addf %85, %89 : vector<32x256xf32>
    %91 = arith.addf %46, %90 : vector<32x256xf32>
    %cst_50 = arith.constant 0.000000e+00 : f32
    %92 = vector.broadcast %cst_50 : f32 to vector<32x256xf32>
    %93 = arith.cmpf ogt, %91, %92 : vector<32x256xf32>
    %cst_51 = arith.constant 2.000000e-01 : f32
    %94 = vector.broadcast %cst_51 : f32 to vector<32x256xf32>
    %95 = arith.mulf %94, %91 : vector<32x256xf32>
    %96 = arith.select %93, %91, %95 : vector<32x256xi1>, vector<32x256xf32>
    %97 = arith.truncf %96 : vector<32x256xf32> to vector<32x256xbf16>
    %cst_52 = arith.constant 0.000000e+00 : bf16
    %98 = vector.broadcast %cst_52 : bf16 to vector<32x9xbf16>
    %99 = tpu.concatenate %98, %97, %98 in 1 : vector<32x9xbf16>, vector<32x256xbf16>, vector<32x9xbf16> -> vector<32x274xbf16>
    %100 = vector.extract_strided_slice %99 {offsets = [0, 0], sizes = [32, 256], strides = [1, 1]} : vector<32x274xbf16> to vector<32x256xbf16>
    %c12 = arith.constant 12 : index
    %c0_53 = arith.constant 0 : index
    %c0_54 = arith.constant 0 : index
    %101 = vector.load %arg2[%c12, %c0_53, %c0_54] : memref<18x32x32xbf16, #tpu.memory_space<vmem>>, vector<1x32x32xbf16>
    %102 = vector.shape_cast %101 : vector<1x32x32xbf16> to vector<32x32xbf16>
    %cst_55 = arith.constant dense<0.000000e+00> : vector<32x256xf32>
    %103 = tpu.matmul %102, %100, %cst_55 {dimension_numbers = #tpu.dot_dimension_numbers<[1], [0], [0], [1], [0, 0, 1, 1], [], []>} : vector<32x32xbf16>, vector<32x256xbf16>, vector<32x256xf32> -> vector<32x256xf32>
    %104 = vector.extract_strided_slice %99 {offsets = [0, 9], sizes = [32, 256], strides = [1, 1]} : vector<32x274xbf16> to vector<32x256xbf16>
    %c13 = arith.constant 13 : index
    %c0_56 = arith.constant 0 : index
    %c0_57 = arith.constant 0 : index
    %105 = vector.load %arg2[%c13, %c0_56, %c0_57] : memref<18x32x32xbf16, #tpu.memory_space<vmem>>, vector<1x32x32xbf16>
    %106 = vector.shape_cast %105 : vector<1x32x32xbf16> to vector<32x32xbf16>
    %cst_58 = arith.constant dense<0.000000e+00> : vector<32x256xf32>
    %107 = tpu.matmul %106, %104, %cst_58 {dimension_numbers = #tpu.dot_dimension_numbers<[1], [0], [0], [1], [0, 0, 1, 1], [], []>} : vector<32x32xbf16>, vector<32x256xbf16>, vector<32x256xf32> -> vector<32x256xf32>
    %108 = arith.addf %103, %107 : vector<32x256xf32>
    %109 = vector.extract_strided_slice %99 {offsets = [0, 18], sizes = [32, 256], strides = [1, 1]} : vector<32x274xbf16> to vector<32x256xbf16>
    %c14 = arith.constant 14 : index
    %c0_59 = arith.constant 0 : index
    %c0_60 = arith.constant 0 : index
    %110 = vector.load %arg2[%c14, %c0_59, %c0_60] : memref<18x32x32xbf16, #tpu.memory_space<vmem>>, vector<1x32x32xbf16>
    %111 = vector.shape_cast %110 : vector<1x32x32xbf16> to vector<32x32xbf16>
    %cst_61 = arith.constant dense<0.000000e+00> : vector<32x256xf32>
    %112 = tpu.matmul %111, %109, %cst_61 {dimension_numbers = #tpu.dot_dimension_numbers<[1], [0], [0], [1], [0, 0, 1, 1], [], []>} : vector<32x32xbf16>, vector<32x256xbf16>, vector<32x256xf32> -> vector<32x256xf32>
    %113 = arith.addf %108, %112 : vector<32x256xf32>
    %cst_62 = arith.constant 0.000000e+00 : f32
    %114 = vector.broadcast %cst_62 : f32 to vector<32x256xf32>
    %115 = arith.cmpf ogt, %113, %114 : vector<32x256xf32>
    %cst_63 = arith.constant 2.000000e-01 : f32
    %116 = vector.broadcast %cst_63 : f32 to vector<32x256xf32>
    %117 = arith.mulf %116, %113 : vector<32x256xf32>
    %118 = arith.select %115, %113, %117 : vector<32x256xi1>, vector<32x256xf32>
    %119 = arith.truncf %118 : vector<32x256xf32> to vector<32x256xbf16>
    %cst_64 = arith.constant 0.000000e+00 : bf16
    %120 = vector.broadcast %cst_64 : bf16 to vector<32x1xbf16>
    %121 = tpu.concatenate %120, %119, %120 in 1 : vector<32x1xbf16>, vector<32x256xbf16>, vector<32x1xbf16> -> vector<32x258xbf16>
    %122 = vector.extract_strided_slice %121 {offsets = [0, 0], sizes = [32, 256], strides = [1, 1]} : vector<32x258xbf16> to vector<32x256xbf16>
    %c15 = arith.constant 15 : index
    %c0_65 = arith.constant 0 : index
    %c0_66 = arith.constant 0 : index
    %123 = vector.load %arg2[%c15, %c0_65, %c0_66] : memref<18x32x32xbf16, #tpu.memory_space<vmem>>, vector<1x32x32xbf16>
    %124 = vector.shape_cast %123 : vector<1x32x32xbf16> to vector<32x32xbf16>
    %cst_67 = arith.constant dense<0.000000e+00> : vector<32x256xf32>
    %125 = tpu.matmul %124, %122, %cst_67 {dimension_numbers = #tpu.dot_dimension_numbers<[1], [0], [0], [1], [0, 0, 1, 1], [], []>} : vector<32x32xbf16>, vector<32x256xbf16>, vector<32x256xf32> -> vector<32x256xf32>
    %126 = vector.extract_strided_slice %121 {offsets = [0, 1], sizes = [32, 256], strides = [1, 1]} : vector<32x258xbf16> to vector<32x256xbf16>
    %c16 = arith.constant 16 : index
    %c0_68 = arith.constant 0 : index
    %c0_69 = arith.constant 0 : index
    %127 = vector.load %arg2[%c16, %c0_68, %c0_69] : memref<18x32x32xbf16, #tpu.memory_space<vmem>>, vector<1x32x32xbf16>
    %128 = vector.shape_cast %127 : vector<1x32x32xbf16> to vector<32x32xbf16>
    %cst_70 = arith.constant dense<0.000000e+00> : vector<32x256xf32>
    %129 = tpu.matmul %128, %126, %cst_70 {dimension_numbers = #tpu.dot_dimension_numbers<[1], [0], [0], [1], [0, 0, 1, 1], [], []>} : vector<32x32xbf16>, vector<32x256xbf16>, vector<32x256xf32> -> vector<32x256xf32>
    %130 = arith.addf %125, %129 : vector<32x256xf32>
    %131 = vector.extract_strided_slice %121 {offsets = [0, 2], sizes = [32, 256], strides = [1, 1]} : vector<32x258xbf16> to vector<32x256xbf16>
    %c17 = arith.constant 17 : index
    %c0_71 = arith.constant 0 : index
    %c0_72 = arith.constant 0 : index
    %132 = vector.load %arg2[%c17, %c0_71, %c0_72] : memref<18x32x32xbf16, #tpu.memory_space<vmem>>, vector<1x32x32xbf16>
    %133 = vector.shape_cast %132 : vector<1x32x32xbf16> to vector<32x32xbf16>
    %cst_73 = arith.constant dense<0.000000e+00> : vector<32x256xf32>
    %134 = tpu.matmul %133, %131, %cst_73 {dimension_numbers = #tpu.dot_dimension_numbers<[1], [0], [0], [1], [0, 0, 1, 1], [], []>} : vector<32x32xbf16>, vector<32x256xbf16>, vector<32x256xf32> -> vector<32x256xf32>
    %135 = arith.addf %130, %134 : vector<32x256xf32>
    %136 = arith.addf %91, %135 : vector<32x256xf32>
    %c0_74 = arith.constant 0 : index
    %c0_75 = arith.constant 0 : index
    %c0_76 = arith.constant 0 : index
    %137 = vector.load %arg3[%c0_74, %c0_75, %c0_76] : memref<1x32x256xf32, #tpu.memory_space<vmem>>, vector<1x32x256xf32>
    %138 = vector.shape_cast %137 : vector<1x32x256xf32> to vector<32x256xf32>
    %139 = vector.shape_cast %136 : vector<32x256xf32> to vector<1x32x256xf32>
    tpu.vector_store %arg3[%c0_74, %c0_75, %c0_76], %139 {strides = array<i32>} : memref<1x32x256xf32, #tpu.memory_space<vmem>>, vector<1x32x256xf32>,
    return
  }
  func.func @transform_0(%arg0: i32) -> (i32, i32, i32) {
    %c0_i32 = arith.constant 0 : i32
    %c0_i32_0 = arith.constant 0 : i32
    %c0_i32_1 = arith.constant 0 : i32
    return %arg0, %c0_i32, %c0_i32_0 : i32, i32, i32
  }
  func.func @transform_1(%arg0: i32) -> (i32, i32, i32) {
    %c0_i32 = arith.constant 0 : i32
    %c0_i32_0 = arith.constant 0 : i32
    %c0_i32_1 = arith.constant 0 : i32
    %c0_i32_2 = arith.constant 0 : i32
    return %c0_i32, %c0_i32_0, %c0_i32_1 : i32, i32, i32
  }
  func.func @transform_2(%arg0: i32) -> (i32, i32, i32) {
    %c0_i32 = arith.constant 0 : i32
    %c0_i32_0 = arith.constant 0 : i32
    %c0_i32_1 = arith.constant 0 : i32
    return %arg0, %c0_i32, %c0_i32_0 : i32, i32, i32
  }
}

</mosaic_0001>

<bundles_post_ra>
// kernel: residual_stack_forward.1
= control target key start
LH: loop header
LB: loop body
LE: loop exit
PB: predicated region body
PF: predicated region fallthrough
CT: control target
= control target key end

     0   :  { %7 = vsyncpa [#allocation3], 0  ;;  %s3287_s0 = inlined_call_operand.vmem [shape: f32[2,32,256], index: 0, kind: input, shape index: {}]   ;;  %s3288_s1 = inlined_call_operand.vmem [shape: bf16[18,32,32], index: 1, kind: input, shape index: {}]   ;;  %s3289_s2 = inlined_call_operand.hbm [shape: f32[2,32,256], index: 2, kind: output, shape index: {}]  }
   0x1   :  { %9 = vsyncpa [#allocation3 + $0x1], 0  ;;  %s2693_s9 = smov 0   ;;  %s2695_s10 = smov 0  }
   0x2   :  { %s2697_s11 = smov 0   ;;  %s2699_s12 = smov 0  }
   0x3 LB: > { %s2714_s13 = sadd.s32 4294967295, %s2663_s12   ;;  %s2240_s14 = sadd.s32 4294967294, %s2663_s12   ;;  %s2663_s12 = sphi %s2699_s12, %s3297_s12   ;;  %s2659_s11 = sphi %s2697_s11, %s3296_s11   ;;  %s2655_s10 = sphi %s2695_s10, %s3295_s10   ;;  %s2651_s9 = sphi %s2693_s9, %s3294_s9  }
   0x4   : > { %s2718_s15 = sadd.s32 1, %s2663_s12   ;;  %s69_s16 = sadd.s32 1, %s2659_s11 }
   0x5   : > { %s66_s17 = ssub.s32 %s2663_s12, %s2718_s15  ;;  %p79_p0 = scmp.ne.s32.totalorder %s2659_s11, %s2655_s10 }
   0x6   : > { %p67_p1 = scmp.eq.s32.totalorder %s66_s17, 0  ;;  %p80_p2 = scmp.eq.s32.totalorder %s2714_s13, 1 }
   0x7   : > { %p85_p3 = scmp.ne.s32.totalorder %s2655_s10, %s2651_s9  ;;  %p86_p4 = scmp.eq.s32.totalorder %s2240_s14, 1 }
   0x8   : > { %s2729_s18 = scalar_select %p67_p1, %s2659_s11, %s69_s16  }
   0x9   : > { %p2731_p5 = por %p80_p2, %p79_p0  ;;  %p2735_p6 = por %p86_p4, %p85_p3 }
   0xa   : > { %p2243_p7 = scmp.ge.s32.totalorder %s2663_s12, 1  ;;  %p115_p8 = scmp.lt.s32.totalorder %s2663_s12, 3 }
   0xc   : > { %p116_p9 = pnand %p2243_p7, %p115_p8 }
   0xd   : > { %p137_p10 = scmp.lt.s32.totalorder (!%p116_p9), %s2714_s13, 1  ;;  %s2665_s26 = smov (!%p116_p9), 1   ;;  %vm191_vm8 = vcmask (!%p116_p9), 7168   ;;  %v2666_v33 = vmov (!%p116_p9), 0   ;;  %vm243_vm9 = vcmask (!%p116_p9), 1039360   ;;  %v2565_v49 = vld [vmem:[%s3288_s1 + $0x10] sm:$0xff] (!%p116_p9)  }
   0xe   : > { %119 = sbr.rel (%p116_p9) target bundleno = 3051 (0xbeb), region = 28  ;;  %291 = vmatprep.mubr.bf16.mxu0 (!%p116_p9), %v2666_v33  ;;  %620 = vmatprep.mubr.bf16.mxu1 (!%p116_p9), %v2666_v33  ;;  %s2667_s27 = smov (!%p116_p9), 127   ;;  %vm252_vm10 = vcmask (!%p116_p9), 261120   ;;  %vm2818_vm11 = vmneg (!%p116_p9), %vm191_vm8  ;;  %vm408_vm12 = vcmask (!%p116_p9), 1031168   ;;  %v2566_v53 = vld [vmem:[%s3288_s1 + $0x18] sm:$0xff] (!%p116_p9)   ;;  %v2567_v57 = vld [vmem:[%s3288_s1] sm:$0xff] (!%p116_p9)  }
   0xf   : > { %s2668_s28 = smov (!%p116_p9), 126   ;;  %v2568_v63 = vld [vmem:[%s3288_s1 + $0x8] sm:$0xff] (!%p116_p9)   ;;  %s2669_s14 = smov (!%p116_p9), 3  }
  0x10   : > { %s2670_s16 = smov (!%p116_p9), 125   ;;  %s2671_s17 = smov (!%p116_p9), 122  }
  0x11   : > { %s2672_s4 = smov (!%p116_p9), 9   ;;  %s2673_s5 = smov (!%p116_p9), 119  }
  0x12   : > { %s2674_s6 = smov (!%p116_p9), 110   ;;  %s2417_s24 = sshll.u32 (!%p116_p9), %s2714_s13, 10 }
  0x15   : > { %s138_s21 = scalar_select %p137_p10, %s2714_s13, 1 }
  0x17   : > { %s2416_s22 = sshll.u32 %s138_s21, 6  ;;  %s134_s21 = sand.u32 1, %s2655_s10  }
  0x18   : > { %s141_s25 = scalar_lea.vmem %s3287_s0, %s2416_s22  ;;  %s2244_s22 = sshll.u32 %s134_s21, 6 }
  0x19   : > { %v2746_v0 = vld [vmem:[%s141_s25] sm:$0xff]  ;;  %v2748_v1 = vld [vmem:[%s141_s25 + $0x10] sm:$0xff]  ;;  %v2760_v7 = vld [vmem:[%s141_s25 + $0x8] sm:$0xff]  ;;  %s136_s23 = scalar_lea.vmem [#allocation2], %s2244_s22  ;;  %s3246_s13 = scalar_lea.sflag [#allocation3], %s134_s21 }
  0x1a   : > { %v2750_v2 = vld [vmem:[%s141_s25 + $0x20] sm:$0xff]  ;;  %vm151_vm0 = vcmp.gt.f32.partialorder %v2746_v0, 0.0  ;;  %vm153_vm1 = vcmp.gt.f32.partialorder %v2748_v1, 0.0  ;;  %v159_v3 = vmul.f32 0.2, %v2746_v0  ;;  %v2756_v5 = vld [vmem:[%s141_s25 + $0x30] sm:$0xff] }
  0x1b   : > { %v161_v4 = vmul.f32 0.2, %v2748_v1  ;;  %vm155_vm2 = vcmp.gt.f32.partialorder %v2750_v2, 0.0  ;;  %v163_v6 = vmul.f32 0.2, %v2750_v2  ;;  %v2762_v8 = vld [vmem:[%s141_s25 + $0x18] sm:$0xff] }
  0x1c   : > { %v167_v9 = vsel %vm151_vm0, %v2746_v0, %v159_v3  ;;  %vm157_vm3 = vcmp.gt.f32.partialorder %v2756_v5, 0.0  ;;  %v165_v11 = vmul.f32 0.2, %v2756_v5  ;;  %v2768_v12 = vld [vmem:[%s141_s25 + $0x28] sm:$0xff]  ;;  %v2770_v13 = vld [vmem:[%s141_s25 + $0x38] sm:$0xff]  ;;  %vm152_vm4 = vcmp.gt.f32.partialorder %v2760_v7, 0.0 }
  0x1d   : > { %v169_v10 = vsel %vm153_vm1, %v2748_v1, %v161_v4  ;;  %v171_v15 = vsel %vm155_vm2, %v2750_v2, %v163_v6  ;;  %vm154_vm5 = vcmp.gt.f32.partialorder %v2762_v8, 0.0  ;;  %v160_v17 = vmul.f32 0.2, %v2760_v7  ;;  %v2569_v3 = vld [vmem:[%s3288_s1 + $0x20] sm:$0xff]   ;;  %v2570_v4 = vld [vmem:[%s3288_s1 + $0x28] sm:$0xff]   ;;  %s2178_s25 = sshll.u32 %s136_s23, 4  ;;  %s3241_s25 = int_to_ptr.vmem [resolvable:$true] %s2178_s25 }
  0x1e   : > { %v175_v14 = vpack.c.bf16 %v169_v10, %v167_v9  ;;  %v173_v16 = vsel %vm157_vm3, %v2756_v5, %v165_v11  ;;  %v162_v18 = vmul.f32 0.2, %v2762_v8  ;;  %vm156_vm6 = vcmp.gt.f32.partialorder %v2768_v12, 0.0 }
  0x1f   : > { %v177_v19 = vpack.c.bf16 %v173_v16, %v171_v15  ;;  %vm158_vm7 = vcmp.gt.f32.partialorder %v2770_v13, 0.0  ;;  %v164_v20 = vmul.f32 0.2, %v2768_v12  ;;  %v166_v21 = vmul.f32 0.2, %v2770_v13 }
  0x20   : > { %183 = vrot.lane.b32.xlu0 %v175_v14, %s2665_s26  ;;  %v168_v22 = vsel %vm152_vm4, %v2760_v7, %v160_v17  ;;  %v170_v23 = vsel %vm154_vm5, %v2762_v8, %v162_v18 }
  0x21   : > { %187 = vrot.lane.b32.xlu1 %v177_v19, %s2665_s26  ;;  %v176_v24 = vpack.c.bf16 %v170_v23, %v168_v22  ;;  %v172_v25 = vsel %vm156_vm6, %v2768_v12, %v164_v20  ;;  %v174_v26 = vsel %vm158_vm7, %v2770_v13, %v166_v21 }
  0x22   : > { %v178_v27 = vpack.c.bf16 %v174_v26, %v172_v25 }
  0x24   : > { %185 = vrot.lane.b32.xlu0 %v176_v24, %s2665_s26 }
  0x25   : > { %189 = vrot.lane.b32.xlu1 %v178_v27, %s2665_s26 }
  0x92   : > { %v184_v28 = vpop.permute.xlu0 %183 }
  0x93   : > { %v188_v29 = vpop.permute.xlu1 %187  ;;  %v199_v36 = vsel %vm191_vm8, 0, %v184_v28 }
  0x94   : > { %v202_v37 = vsel %vm191_vm8, 0, %v188_v29 }
  0x96   : > { %v186_v30 = vpop.permute.xlu0 %185 }
  0x97   : > { %v205_v31 = vsel %vm191_vm8, %v186_v30, 0  ;;  %v192_v32 = vsel %vm191_vm8, %v184_v28, %v186_v30  ;;  %v190_v34 = vpop.permute.xlu1 %189 }
  0x98   : > { %235 = vrot.lane.b32.xlu1 %v205_v31, %s2667_s27  ;;  %233 = vrot.lane.b32.xlu0 %v192_v32, %s2667_s27  ;;  %v193_v35 = vsel %vm191_vm8, %v188_v29, %v190_v34  ;;  %v207_v38 = vsel %vm191_vm8, %v190_v34, 0 }
  0x9c   : > { %239 = vrot.lane.b32.xlu1 %v193_v35, %s2667_s27  ;;  %231 = vrot.lane.b32.xlu0 %v199_v36, %s2667_s27 }
  0xa0   : > { %237 = vrot.lane.b32.xlu1 %v202_v37, %s2667_s27  ;;  %241 = vrot.lane.b32.xlu0 %v207_v38, %s2667_s27 }
  0xa4   : > { %400 = vrot.lane.b32.xlu1 %v205_v31, %s2668_s28  ;;  %398 = vrot.lane.b32.xlu0 %v192_v32, %s2668_s28 }
  0xa8   : > { %404 = vrot.lane.b32.xlu1 %v193_v35, %s2668_s28  ;;  %396 = vrot.lane.b32.xlu0 %v199_v36, %s2668_s28 }
  0xac   : > { %402 = vrot.lane.b32.xlu1 %v202_v37, %s2668_s28  ;;  %406 = vrot.lane.b32.xlu0 %v207_v38, %s2668_s28 }
 0x10a   : > { %v236_v39 = vpop.permute.xlu1 %235  ;;  %v234_v40 = vpop.permute.xlu0 %233 }
 0x10b   : > { %v245_v41 = vsel %vm243_vm9, %v234_v40, %v236_v39 }
 0x10c   : > { %259 = vmatprep.subr.bf16.mxu0 %v245_v41 }
 0x10e   : > { %v240_v42 = vpop.permute.xlu1 %239  ;;  %v232_v43 = vpop.permute.xlu0 %231 }
 0x10f   : > { %v244_v44 = vsel %vm243_vm9, %v232_v43, %v234_v40 }
 0x110   : > { %260 = vmatpush1.bf16.msra.mxu0 %v244_v44 }
 0x112   : > { %v238_v45 = vpop.permute.xlu1 %237  ;;  %v242_v46 = vpop.permute.xlu0 %241 }
 0x113   : > { %v247_v47 = vsel %vm243_vm9, %v240_v42, %v242_v46  ;;  %v246_v48 = vsel %vm243_vm9, %v238_v45, %v240_v42 }
 0x114   : > { %261 = vmatprep.subr.bf16.mxu0 %v247_v47 }
 0x115   : > { %262 = vmatpush1.bf16.msra.mxu0 %v246_v48 }
 0x116   : > { %328 = vmatprep.subr.bf16.mxu0 %v192_v32  ;;  %v401_v51 = vpop.permute.xlu1 %400  ;;  %v399_v52 = vpop.permute.xlu0 %398 }
 0x117   : > { %v410_v54 = vsel %vm408_vm12, %v399_v52, %v401_v51 }
 0x118   : > { %2253 = vmatmul.mubr.msk.bf16.vlgmr.msra.gmra.mrb[0].mxu0 %vm252_vm10, %v2565_v49 }
 0x119   : > { %2258 = vmatpush1.bf16.msk.msra.mxu0 %vm2818_vm11, %v184_v28  ;;  %301 = vmatprep.mubr.bf16.mxu0 %v2666_v33 }
 0x11a   : > { %330 = vmatprep.subr.bf16.mxu0 %v193_v35  ;;  %v397_v55 = vpop.permute.xlu0 %396  ;;  %v405_v56 = vpop.permute.xlu1 %404 }
 0x11b   : > { %v409_v59 = vsel %vm408_vm12, %v397_v55, %v399_v52 }
 0x11d   : > { %2260 = vmatpush1.bf16.msk.msra.mxu0 %vm2818_vm11, %v188_v29 }
 0x11e   : > { %423 = vmatprep.subr.bf16.mxu0 %v410_v54  ;;  %v407_v58 = vpop.permute.xlu0 %406  ;;  %v403_v60 = vpop.permute.xlu1 %402 }
 0x11f   : > { %v412_v61 = vsel %vm408_vm12, %v405_v56, %v407_v58  ;;  %v411_v62 = vsel %vm408_vm12, %v403_v60, %v405_v56  ;;  %v2571_v60 = vld [vmem:[%s3288_s1 + $0x40] sm:$0xff]  }
 0x120   : > { %2254 = vmatmul.mubr.msk.bf16.gmra.mrb[4].mxu0 %vm252_vm10, %v2566_v53 }
 0x121   : > { %360 = vmatprep.mubr.bf16.mxu0 %v2666_v33 }
 0x128   : > { %2261 = vmatmul.mubr.msk.bf16.vlgmr.msra.gmra.mrb[0].mxu0 %vm252_vm10, %v2567_v57 }
 0x129   : > { %424 = vmatpush1.bf16.msra.mxu0 %v409_v59  ;;  %370 = vmatprep.mubr.bf16.mxu0 %v2666_v33 }
 0x12a   : > { %425 = vmatprep.subr.bf16.mxu0 %v412_v61 }
 0x12d   : > { %426 = vmatpush1.bf16.msra.mxu0 %v411_v62 }
 0x130   : > { %2262 = vmatmul.mubr.msk.bf16.gmra.mrb[4].mxu0 %vm252_vm10, %v2568_v63  ;;  %v2572_v63 = vld [vmem:[%s3288_s1 + $0x48] sm:$0xff]  }
 0x131   : > { %455 = vmatprep.mubr.bf16.mxu0 %v2666_v33 }
 0x138   : > { %2269 = vmatmul.mubr.msk.bf16.vlgmr.msra.gmra.mrb[0].mxu0 %vm252_vm10, %v2569_v3 }
 0x139   : > { %465 = vmatprep.mubr.bf16.mxu0 %v2666_v33 }
 0x140   : > { %2270 = vmatmul.mubr.msk.bf16.gmra.mrb[4].mxu0 %vm252_vm10, %v2570_v4 }
 0x141   : > { %959 = vmatprep.mubr.bf16.mxu0 %v2666_v33 }
 0x20b   : > { %v457_v6 = vpop.f32.mrb[0].mxu0 }
 0x20c   : > { %v492_v9 = vmul.f32 0.2, %v457_v6  ;;  %v459_v10 = vpop.f32.mrb[1].mxu0  ;;  %vm484_vm13 = vcmp.gt.f32.partialorder %v457_v6, 0.0 }
 0x20d   : > { %v493_v11 = vmul.f32 0.2, %v459_v10  ;;  %v461_v14 = vpop.f32.mrb[2].mxu0  ;;  %vm485_vm14 = vcmp.gt.f32.partialorder %v459_v10, 0.0 }
 0x20e   : > { %vm486_vm15 = vcmp.gt.f32.partialorder %v461_v14, 0.0  ;;  %v494_v15 = vmul.f32 0.2, %v461_v14  ;;  %v463_v16 = vpop.f32.mrb[3].mxu0  ;;  %v500_v18 = vsel %vm484_vm13, %v457_v6, %v492_v9  ;;  %v2573_v9 = vld [vmem:[%s3288_s1 + $0x30] sm:$0xff]  }
 0x20f   : > { %vm487_vm0 = vcmp.gt.f32.partialorder %v463_v16, 0.0  ;;  %v495_v17 = vmul.f32 0.2, %v463_v16  ;;  %v501_v20 = vsel %vm485_vm14, %v459_v10, %v493_v11 }
 0x210   : > { %v502_v19 = vsel %vm486_vm15, %v461_v14, %v494_v15 }
 0x211   : > { %v503_v21 = vsel %vm487_vm0, %v463_v16, %v495_v17  ;;  %v508_v22 = vpack.c.bf16 %v502_v19, %v500_v18  ;;  %v2574_v17 = vld [vmem:[%s3288_s1 + $0x38] sm:$0xff]   ;;  %v2575_v18 = vld [vmem:[%s3288_s1 + $0x50] sm:$0xff]  }
 0x212   : > { %v509_v23 = vpack.c.bf16 %v503_v21, %v501_v20  ;;  %v2576_v19 = vld [vmem:[%s3288_s1 + $0x58] sm:$0xff]  }
 0x213   : > { %516 = vrot.lane.b32.xlu0 %v508_v22, %s2665_s26  ;;  %v467_v24 = vpop.f32.mrb[4].mxu0 }
 0x214   : > { %v496_v25 = vmul.f32 0.2, %v467_v24  ;;  %518 = vrot.lane.b32.xlu1 %v509_v23, %s2665_s26  ;;  %v469_v26 = vpop.f32.mrb[5].mxu0  ;;  %vm488_vm1 = vcmp.gt.f32.partialorder %v467_v24, 0.0 }
 0x215   : > { %v497_v27 = vmul.f32 0.2, %v469_v26  ;;  %v471_v28 = vpop.f32.mrb[6].mxu0  ;;  %vm489_vm2 = vcmp.gt.f32.partialorder %v469_v26, 0.0 }
 0x216   : > { %vm490_vm3 = vcmp.gt.f32.partialorder %v471_v28, 0.0  ;;  %v498_v29 = vmul.f32 0.2, %v471_v28  ;;  %v473_v30 = vpop.f32.mrb[7].mxu0  ;;  %v504_v32 = vsel %vm488_vm1, %v467_v24, %v496_v25 }
 0x217   : > { %vm491_vm4 = vcmp.gt.f32.partialorder %v473_v30, 0.0  ;;  %v499_v31 = vmul.f32 0.2, %v473_v30  ;;  %v505_v35 = vsel %vm489_vm2, %v469_v26, %v497_v27  ;;  %vm860_vm2 = vcmask 23552  }
 0x218   : > { %v506_v34 = vsel %vm490_vm3, %v471_v28, %v498_v29  ;;  %vm912_vm3 = vcmask 1022976  }
 0x219   : > { %v507_v36 = vsel %vm491_vm4, %v473_v30, %v499_v31  ;;  %v510_v37 = vpack.c.bf16 %v506_v34, %v504_v32  ;;  %vm2313_vm4 = vmneg %vm860_vm2 }
 0x21a   : > { %v511_v38 = vpack.c.bf16 %v507_v36, %v505_v35 }
 0x21b   : > { %520 = vrot.lane.b32.xlu0 %v510_v37, %s2665_s26 }
 0x21c   : > { %522 = vrot.lane.b32.xlu1 %v511_v38, %s2665_s26 }
 0x285   : > { %v517_v39 = vpop.permute.xlu0 %516 }
 0x286   : > { %v519_v40 = vpop.permute.xlu1 %518  ;;  %v529_v41 = vsel %vm191_vm8, 0, %v517_v39 }
 0x287   : > { %562 = vrot.lane.b32.xlu0 %v529_v41, %s2667_s27  ;;  %v535_v42 = vsel %vm191_vm8, %v519_v40, 0  ;;  %v524_v43 = vsel %vm191_vm8, %v517_v39, %v519_v40 }
 0x288   : > { %566 = vrot.lane.b32.xlu1 %v535_v42, %s2667_s27 }
 0x28b   : > { %564 = vrot.lane.b32.xlu0 %v524_v43, %s2667_s27 }
 0x28d   : > { %v521_v44 = vpop.permute.xlu0 %520 }
 0x28e   : > { %v523_v45 = vpop.permute.xlu1 %522  ;;  %v532_v48 = vsel %vm191_vm8, 0, %v521_v44 }
 0x28f   : > { %v537_v46 = vsel %vm191_vm8, %v523_v45, 0  ;;  %v525_v47 = vsel %vm191_vm8, %v521_v44, %v523_v45 }
 0x290   : > { %572 = vrot.lane.b32.xlu0 %v537_v46, %s2667_s27  ;;  %570 = vrot.lane.b32.xlu1 %v525_v47, %s2667_s27 }
 0x294   : > { %727 = vrot.lane.b32.xlu0 %v524_v43, %s2668_s28  ;;  %568 = vrot.lane.b32.xlu1 %v532_v48, %s2667_s27 }
 0x298   : > { %725 = vrot.lane.b32.xlu0 %v529_v41, %s2668_s28  ;;  %729 = vrot.lane.b32.xlu1 %v535_v42, %s2668_s28 }
 0x29c   : > { %735 = vrot.lane.b32.xlu0 %v537_v46, %s2668_s28  ;;  %733 = vrot.lane.b32.xlu1 %v525_v47, %s2668_s28 }
 0x2a0   : > { %731 = vrot.lane.b32.xlu1 %v532_v48, %s2668_s28 }
 0x2f9   : > { %v563_v49 = vpop.permute.xlu0 %562 }
 0x2fa   : > { %v567_v51 = vpop.permute.xlu1 %566 }
 0x2fd   : > { %v565_v52 = vpop.permute.xlu0 %564 }
 0x2fe   : > { %v575_v53 = vsel %vm243_vm9, %v565_v52, %v567_v51  ;;  %v574_v54 = vsel %vm243_vm9, %v563_v49, %v565_v52 }
 0x2ff   : > { %588 = vmatprep.subr.bf16.mxu1 %v575_v53 }
 0x300   : > { %589 = vmatpush1.bf16.msra.mxu1 %v574_v54 }
 0x302   : > { %v573_v55 = vpop.permute.xlu0 %572  ;;  %v571_v56 = vpop.permute.xlu1 %570 }
 0x303   : > { %v577_v57 = vsel %vm243_vm9, %v571_v56, %v573_v55 }
 0x304   : > { %590 = vmatprep.subr.bf16.mxu1 %v577_v57 }
 0x306   : > { %v569_v58 = vpop.permute.xlu1 %568  ;;  %v728_v61 = vpop.permute.xlu0 %727 }
 0x307   : > { %v576_v59 = vsel %vm243_vm9, %v569_v58, %v571_v56 }
 0x308   : > { %591 = vmatpush1.bf16.msra.mxu1 %v576_v59 }
 0x309   : > { %657 = vmatprep.subr.bf16.mxu1 %v524_v43 }
 0x30a   : > { %v730_v62 = vpop.permute.xlu1 %729  ;;  %v726_v4 = vpop.permute.xlu0 %725 }
 0x30b   : > { %2281 = vmatmul.mubr.msk.bf16.vlgmr.msra.gmra.mrb[0].mxu1 %vm252_vm10, %v2571_v60  ;;  %v738_v3 = vsel %vm408_vm12, %v728_v61, %v730_v62  ;;  %v737_v11 = vsel %vm408_vm12, %v726_v4, %v728_v61 }
 0x30c   : > { %2286 = vmatpush1.bf16.msk.msra.mxu1 %vm2818_vm11, %v517_v39  ;;  %630 = vmatprep.mubr.bf16.mxu1 %v2666_v33 }
 0x30d   : > { %659 = vmatprep.subr.bf16.mxu1 %v525_v47 }
 0x30e   : > { %v734_v6 = vpop.permute.xlu1 %733  ;;  %v736_v10 = vpop.permute.xlu0 %735 }
 0x30f   : > { %v740_v15 = vsel %vm408_vm12, %v734_v6, %v736_v10 }
 0x310   : > { %2288 = vmatpush1.bf16.msk.msra.mxu1 %vm2818_vm11, %v521_v44 }
 0x311   : > { %751 = vmatprep.subr.bf16.mxu1 %v738_v3 }
 0x312   : > { %v732_v14 = vpop.permute.xlu1 %731 }
 0x313   : > { %2282 = vmatmul.mubr.msk.bf16.gmra.mrb[4].mxu1 %vm252_vm10, %v2572_v63  ;;  %v739_v16 = vsel %vm408_vm12, %v732_v14, %v734_v6  ;;  %v2577_v14 = vld [vmem:[%s3288_s1 + $0x70] sm:$0xff]  }
 0x314   : > { %689 = vmatprep.mubr.bf16.mxu1 %v2666_v33 }
 0x31b   : > { %2289 = vmatmul.mubr.msk.bf16.vlgmr.msra.gmra.mrb[0].mxu1 %vm252_vm10, %v2573_v9 }
 0x31c   : > { %752 = vmatpush1.bf16.msra.mxu1 %v737_v11  ;;  %699 = vmatprep.mubr.bf16.mxu1 %v2666_v33 }
 0x31d   : > { %753 = vmatprep.subr.bf16.mxu1 %v740_v15 }
 0x320   : > { %754 = vmatpush1.bf16.msra.mxu1 %v739_v16 }
 0x323   : > { %2290 = vmatmul.mubr.msk.bf16.gmra.mrb[4].mxu1 %vm252_vm10, %v2574_v17  ;;  %v2578_v17 = vld [vmem:[%s3288_s1 + $0x78] sm:$0xff]  }
 0x324   : > { %783 = vmatprep.mubr.bf16.mxu1 %v2666_v33 }
 0x32b   : > { %2297 = vmatmul.mubr.msk.bf16.vlgmr.msra.gmra.mrb[0].mxu1 %vm252_vm10, %v2575_v18 }
 0x32c   : > { %793 = vmatprep.mubr.bf16.mxu1 %v2666_v33 }
 0x333   : > { %2298 = vmatmul.mubr.msk.bf16.gmra.mrb[4].mxu1 %vm252_vm10, %v2576_v19 }
 0x334   : > { %1288 = vmatprep.mubr.bf16.mxu1 %v2666_v33 }
 0x3fe   : > { %v785_v20 = vpop.f32.mrb[0].mxu1 }
 0x3ff   : > { %v2922_v21 = vadd.f32 %v785_v20, %v2746_v0  ;;  %v787_v22 = vpop.f32.mrb[1].mxu1 }
 0x400   : > { %v2925_v23 = vadd.f32 %v787_v22, %v2760_v7  ;;  %v789_v24 = vpop.f32.mrb[2].mxu1  ;;  %v2579_v22 = vld [vmem:[%s3288_s1 + $0x60] sm:$0xff]  }
 0x401   : > { %v828_v25 = vmul.f32 0.2, %v2922_v21  ;;  %v2929_v26 = vadd.f32 %v789_v24, %v2748_v1  ;;  %v791_v27 = vpop.f32.mrb[3].mxu1  ;;  %vm820_vm5 = vcmp.gt.f32.partialorder %v2922_v21, 0.0 }
 0x402   : > { %v829_v28 = vmul.f32 0.2, %v2925_v23  ;;  %v2933_v29 = vadd.f32 %v791_v27, %v2762_v8  ;;  %vm821_vm7 = vcmp.gt.f32.partialorder %v2925_v23, 0.0 }
 0x403   : > { %v830_v0 = vmul.f32 0.2, %v2929_v26  ;;  %vm822_vm6 = vcmp.gt.f32.partialorder %v2929_v26, 0.0  ;;  %v836_v1 = vsel %vm820_vm5, %v2922_v21, %v828_v25  ;;  %vm1076_vm5 = vcmask 998400  }
 0x404   : > { %v831_v7 = vmul.f32 0.2, %v2933_v29  ;;  %vm823_vm13 = vcmp.gt.f32.partialorder %v2933_v29, 0.0  ;;  %v837_v8 = vsel %vm821_vm7, %v2925_v23, %v829_v28 }
 0x405   : > { %v838_v30 = vsel %vm822_vm6, %v2929_v26, %v830_v0 }
 0x406   : > { %v795_v31 = vpop.f32.mrb[4].mxu1  ;;  %v844_v32 = vpack.c.bf16 %v838_v30, %v836_v1  ;;  %v839_v34 = vsel %vm823_vm13, %v2933_v29, %v831_v7  ;;  %v2580_v7 = vld [vmem:[%s3288_s1 + $0x68] sm:$0xff]   ;;  %v2581_v1 = vld [vmem:[%s3288_s1 + $0x80] sm:$0xff]  }
 0x407   : > { %v2946_v35 = vadd.f32 %v795_v31, %v2750_v2  ;;  %v797_v36 = vpop.f32.mrb[5].mxu1  ;;  %v845_v37 = vpack.c.bf16 %v839_v34, %v837_v8  ;;  %v2582_v30 = vld [vmem:[%s3288_s1 + $0x88] sm:$0xff]  }
 0x408   : > { %v2949_v38 = vadd.f32 %v797_v36, %v2768_v12  ;;  %852 = vrot.lane.b32.xlu0 %v844_v32, %s2669_s14  ;;  %v799_v39 = vpop.f32.mrb[6].mxu1 }
 0x409   : > { %v832_v40 = vmul.f32 0.2, %v2946_v35  ;;  %v2953_v41 = vadd.f32 %v799_v39, %v2756_v5  ;;  %854 = vrot.lane.b32.xlu1 %v845_v37, %s2669_s14  ;;  %v801_v42 = vpop.f32.mrb[7].mxu1  ;;  %vm824_vm14 = vcmp.gt.f32.partialorder %v2946_v35, 0.0 }
 0x40a   : > { %v833_v43 = vmul.f32 0.2, %v2949_v38  ;;  %v2957_v2 = vadd.f32 %v801_v42, %v2770_v13  ;;  %vm825_vm0 = vcmp.gt.f32.partialorder %v2949_v38, 0.0 }
 0x40b   : > { %v834_v12 = vmul.f32 0.2, %v2953_v41  ;;  %vm826_vm15 = vcmp.gt.f32.partialorder %v2953_v41, 0.0  ;;  %v840_v5 = vsel %vm824_vm14, %v2946_v35, %v832_v40 }
 0x40c   : > { %v835_v44 = vmul.f32 0.2, %v2957_v2  ;;  %vm827_vm1 = vcmp.gt.f32.partialorder %v2957_v2, 0.0  ;;  %v841_v13 = vsel %vm825_vm0, %v2949_v38, %v833_v43 }
 0x40d   : > { %v842_v45 = vsel %vm826_vm15, %v2953_v41, %v834_v12 }
 0x40e   : > { %v846_v46 = vpack.c.bf16 %v842_v45, %v840_v5  ;;  %v843_v47 = vsel %vm827_vm1, %v2957_v2, %v835_v44 }
 0x40f   : > { %v847_v48 = vpack.c.bf16 %v843_v47, %v841_v13 }
 0x410   : > { %856 = vrot.lane.b32.xlu0 %v846_v46, %s2669_s14 }
 0x411   : > { %858 = vrot.lane.b32.xlu1 %v847_v48, %s2669_s14 }
 0x47a   : > { %v853_v49 = vpop.permute.xlu0 %852 }
 0x47b   : > { %v855_v51 = vpop.permute.xlu1 %854  ;;  %v867_v52 = vsel %vm860_vm2, 0, %v853_v49 }
 0x47c   : > { %900 = vrot.lane.b32.xlu0 %v867_v52, %s2670_s16  ;;  %v873_v53 = vsel %vm860_vm2, %v855_v51, 0  ;;  %v861_v54 = vsel %vm860_vm2, %v853_v49, %v855_v51 }
 0x47d   : > { %904 = vrot.lane.b32.xlu1 %v873_v53, %s2670_s16 }
 0x480   : > { %902 = vrot.lane.b32.xlu0 %v861_v54, %s2670_s16 }
 0x482   : > { %v857_v55 = vpop.permute.xlu0 %856 }
 0x483   : > { %v859_v56 = vpop.permute.xlu1 %858  ;;  %v870_v59 = vsel %vm860_vm2, 0, %v857_v55 }
 0x484   : > { %v875_v57 = vsel %vm860_vm2, %v859_v56, 0  ;;  %v862_v58 = vsel %vm860_vm2, %v857_v55, %v859_v56 }
 0x485   : > { %910 = vrot.lane.b32.xlu0 %v875_v57, %s2670_s16  ;;  %908 = vrot.lane.b32.xlu1 %v862_v58, %s2670_s16 }
 0x489   : > { %1066 = vrot.lane.b32.xlu0 %v861_v54, %s2671_s17  ;;  %906 = vrot.lane.b32.xlu1 %v870_v59, %s2670_s16 }
 0x48d   : > { %1064 = vrot.lane.b32.xlu0 %v867_v52, %s2671_s17  ;;  %1068 = vrot.lane.b32.xlu1 %v873_v53, %s2671_s17 }
 0x491   : > { %1074 = vrot.lane.b32.xlu0 %v875_v57, %s2671_s17  ;;  %1072 = vrot.lane.b32.xlu1 %v862_v58, %s2671_s17 }
 0x495   : > { %1070 = vrot.lane.b32.xlu1 %v870_v59, %s2671_s17 }
 0x4ee   : > { %v901_v60 = vpop.permute.xlu0 %900 }
 0x4ef   : > { %v905_v61 = vpop.permute.xlu1 %904 }
 0x4f2   : > { %v903_v62 = vpop.permute.xlu0 %902 }
 0x4f3   : > { %v913_v63 = vsel %vm912_vm3, %v901_v60, %v903_v62  ;;  %v914_v3 = vsel %vm912_vm3, %v903_v62, %v905_v61 }
 0x4f4   : > { %927 = vmatprep.subr.bf16.mxu0 %v914_v3 }
 0x4f5   : > { %928 = vmatpush1.bf16.msra.mxu0 %v913_v63 }
 0x4f7   : > { %v911_v4 = vpop.permute.xlu0 %910  ;;  %v909_v6 = vpop.permute.xlu1 %908 }
 0x4f8   : > { %v916_v9 = vsel %vm912_vm3, %v909_v6, %v911_v4 }
 0x4f9   : > { %929 = vmatprep.subr.bf16.mxu0 %v916_v9 }
 0x4fb   : > { %v907_v10 = vpop.permute.xlu1 %906  ;;  %v1067_v15 = vpop.permute.xlu0 %1066 }
 0x4fc   : > { %v915_v11 = vsel %vm912_vm3, %v907_v10, %v909_v6 }
 0x4fd   : > { %930 = vmatpush1.bf16.msra.mxu0 %v915_v11 }
 0x4fe   : > { %996 = vmatprep.subr.bf16.mxu0 %v861_v54 }
 0x4ff   : > { %v1069_v16 = vpop.permute.xlu1 %1068  ;;  %v1065_v19 = vpop.permute.xlu0 %1064 }
 0x500   : > { %2309 = vmatmul.mubr.msk.bf16.vlgmr.msra.gmra.mrb[8].mxu0 %vm252_vm10, %v2577_v14  ;;  %v1078_v18 = vsel %vm1076_vm5, %v1067_v15, %v1069_v16  ;;  %v1077_v25 = vsel %vm1076_vm5, %v1065_v19, %v1067_v15 }
 0x501   : > { %2314 = vmatpush1.bf16.msk.msra.mxu0 %vm2313_vm4, %v853_v49  ;;  %969 = vmatprep.mubr.bf16.mxu0 %v2666_v33 }
 0x502   : > { %998 = vmatprep.subr.bf16.mxu0 %v862_v58 }
 0x503   : > { %v1073_v20 = vpop.permute.xlu1 %1072  ;;  %v1075_v24 = vpop.permute.xlu0 %1074 }
 0x504   : > { %v1080_v28 = vsel %vm1076_vm5, %v1073_v20, %v1075_v24 }
 0x505   : > { %2316 = vmatpush1.bf16.msk.msra.mxu0 %vm2313_vm4, %v857_v55 }
 0x506   : > { %1091 = vmatprep.subr.bf16.mxu0 %v1078_v18 }
 0x507   : > { %v1071_v27 = vpop.permute.xlu1 %1070 }
 0x508   : > { %2310 = vmatmul.mubr.msk.bf16.gmra.mrb[12].mxu0 %vm252_vm10, %v2578_v17  ;;  %v1079_v0 = vsel %vm1076_vm5, %v1071_v27, %v1073_v20  ;;  %v2583_v27 = vld [vmem:[%s3288_s1 + $0xa0] sm:$0xff]  }
 0x509   : > { %1028 = vmatprep.mubr.bf16.mxu0 %v2666_v33 }
 0x510   : > { %2317 = vmatmul.mubr.msk.bf16.vlgmr.msra.gmra.mrb[8].mxu0 %vm252_vm10, %v2579_v22 }
 0x511   : > { %1092 = vmatpush1.bf16.msra.mxu0 %v1077_v25  ;;  %1038 = vmatprep.mubr.bf16.mxu0 %v2666_v33 }
 0x512   : > { %1093 = vmatprep.subr.bf16.mxu0 %v1080_v28 }
 0x515   : > { %1094 = vmatpush1.bf16.msra.mxu0 %v1079_v0 }
 0x518   : > { %2318 = vmatmul.mubr.msk.bf16.gmra.mrb[12].mxu0 %vm252_vm10, %v2580_v7  ;;  %v2584_v7 = vld [vmem:[%s3288_s1 + $0xa8] sm:$0xff]  }
 0x519   : > { %1123 = vmatprep.mubr.bf16.mxu0 %v2666_v33 }
 0x520   : > { %2325 = vmatmul.mubr.msk.bf16.vlgmr.msra.gmra.mrb[8].mxu0 %vm252_vm10, %v2581_v1 }
 0x521   : > { %1133 = vmatprep.mubr.bf16.mxu0 %v2666_v33 }
 0x528   : > { %2326 = vmatmul.mubr.msk.bf16.gmra.mrb[12].mxu0 %vm252_vm10, %v2582_v30 }
 0x529   : > { %1627 = vmatprep.mubr.bf16.mxu0 %v2666_v33 }
 0x5f3   : > { %v1125_v31 = vpop.f32.mrb[8].mxu0 }
 0x5f4   : > { %v1160_v32 = vmul.f32 0.2, %v1125_v31  ;;  %v1127_v8 = vpop.f32.mrb[9].mxu0  ;;  %vm1152_vm6 = vcmp.gt.f32.partialorder %v1125_v31, 0.0 }
 0x5f5   : > { %v1161_v34 = vmul.f32 0.2, %v1127_v8  ;;  %v1129_v36 = vpop.f32.mrb[10].mxu0  ;;  %vm1153_vm7 = vcmp.gt.f32.partialorder %v1127_v8, 0.0 }
 0x5f6   : > { %vm1154_vm13 = vcmp.gt.f32.partialorder %v1129_v36, 0.0  ;;  %v1162_v37 = vmul.f32 0.2, %v1129_v36  ;;  %v1131_v39 = vpop.f32.mrb[11].mxu0  ;;  %v1168_v42 = vsel %vm1152_vm6, %v1125_v31, %v1160_v32  ;;  %v2585_v32 = vld [vmem:[%s3288_s1 + $0x90] sm:$0xff]  }
 0x5f7   : > { %vm1155_vm14 = vcmp.gt.f32.partialorder %v1131_v39, 0.0  ;;  %v1163_v40 = vmul.f32 0.2, %v1131_v39  ;;  %v1169_v12 = vsel %vm1153_vm7, %v1127_v8, %v1161_v34 }
 0x5f8   : > { %v1170_v43 = vsel %vm1154_vm13, %v1129_v36, %v1162_v37 }
 0x5f9   : > { %v1171_v44 = vsel %vm1155_vm14, %v1131_v39, %v1163_v40  ;;  %v1176_v5 = vpack.c.bf16 %v1170_v43, %v1168_v42  ;;  %v2586_v40 = vld [vmem:[%s3288_s1 + $0x98] sm:$0xff]   ;;  %v2587_v42 = vld [vmem:[%s3288_s1 + $0xb0] sm:$0xff]  }
 0x5fa   : > { %v1177_v45 = vpack.c.bf16 %v1171_v44, %v1169_v12  ;;  %v2588_v43 = vld [vmem:[%s3288_s1 + $0xb8] sm:$0xff]  }
 0x5fb   : > { %1184 = vrot.lane.b32.xlu0 %v1176_v5, %s2665_s26  ;;  %v1135_v46 = vpop.f32.mrb[12].mxu0 }
 0x5fc   : > { %v1164_v13 = vmul.f32 0.2, %v1135_v46  ;;  %1186 = vrot.lane.b32.xlu1 %v1177_v45, %s2665_s26  ;;  %v1137_v47 = vpop.f32.mrb[13].mxu0  ;;  %vm1156_vm15 = vcmp.gt.f32.partialorder %v1135_v46, 0.0 }
 0x5fd   : > { %v1165_v48 = vmul.f32 0.2, %v1137_v47  ;;  %v1139_v49 = vpop.f32.mrb[14].mxu0  ;;  %vm1157_vm0 = vcmp.gt.f32.partialorder %v1137_v47, 0.0 }
 0x5fe   : > { %vm1158_vm1 = vcmp.gt.f32.partialorder %v1139_v49, 0.0  ;;  %v1166_v51 = vmul.f32 0.2, %v1139_v49  ;;  %v1141_v52 = vpop.f32.mrb[15].mxu0  ;;  %v1172_v54 = vsel %vm1156_vm15, %v1135_v46, %v1164_v13 }
 0x5ff   : > { %vm1159_vm2 = vcmp.gt.f32.partialorder %v1141_v52, 0.0  ;;  %v1167_v53 = vmul.f32 0.2, %v1141_v52  ;;  %v1173_v56 = vsel %vm1157_vm0, %v1137_v47, %v1165_v48  ;;  %vm1528_vm0 = vcmask 72704  }
 0x600   : > { %v1174_v55 = vsel %vm1158_vm1, %v1139_v49, %v1166_v51  ;;  %vm1580_vm1 = vcmask 973824  }
 0x601   : > { %v1175_v57 = vsel %vm1159_vm2, %v1141_v52, %v1167_v53  ;;  %v1178_v58 = vpack.c.bf16 %v1174_v55, %v1172_v54  ;;  %vm2369_vm2 = vmneg %vm1528_vm0 }
 0x602   : > { %v1179_v59 = vpack.c.bf16 %v1175_v57, %v1173_v56 }
 0x603   : > { %1188 = vrot.lane.b32.xlu0 %v1178_v58, %s2665_s26 }
 0x604   : > { %1190 = vrot.lane.b32.xlu1 %v1179_v59, %s2665_s26 }
 0x66d   : > { %v1185_v60 = vpop.permute.xlu0 %1184 }
 0x66e   : > { %v1187_v61 = vpop.permute.xlu1 %1186  ;;  %v1197_v62 = vsel %vm191_vm8, 0, %v1185_v60 }
 0x66f   : > { %1230 = vrot.lane.b32.xlu0 %v1197_v62, %s2667_s27  ;;  %v1203_v63 = vsel %vm191_vm8, %v1187_v61, 0  ;;  %v1192_v3 = vsel %vm191_vm8, %v1185_v60, %v1187_v61 }
 0x670   : > { %1234 = vrot.lane.b32.xlu1 %v1203_v63, %s2667_s27 }
 0x673   : > { %1232 = vrot.lane.b32.xlu0 %v1192_v3, %s2667_s27 }
 0x675   : > { %v1189_v4 = vpop.permute.xlu0 %1188 }
 0x676   : > { %v1191_v6 = vpop.permute.xlu1 %1190  ;;  %v1200_v11 = vsel %vm191_vm8, 0, %v1189_v4 }
 0x677   : > { %v1205_v9 = vsel %vm191_vm8, %v1191_v6, 0  ;;  %v1193_v10 = vsel %vm191_vm8, %v1189_v4, %v1191_v6 }
 0x678   : > { %1240 = vrot.lane.b32.xlu0 %v1205_v9, %s2667_s27  ;;  %1238 = vrot.lane.b32.xlu1 %v1193_v10, %s2667_s27 }
 0x67c   : > { %1395 = vrot.lane.b32.xlu0 %v1192_v3, %s2668_s28  ;;  %1236 = vrot.lane.b32.xlu1 %v1200_v11, %s2667_s27 }
 0x680   : > { %1393 = vrot.lane.b32.xlu0 %v1197_v62, %s2668_s28  ;;  %1397 = vrot.lane.b32.xlu1 %v1203_v63, %s2668_s28 }
 0x684   : > { %1403 = vrot.lane.b32.xlu0 %v1205_v9, %s2668_s28  ;;  %1401 = vrot.lane.b32.xlu1 %v1193_v10, %s2668_s28 }
 0x688   : > { %1399 = vrot.lane.b32.xlu1 %v1200_v11, %s2668_s28 }
 0x6e1   : > { %v1231_v14 = vpop.permute.xlu0 %1230 }
 0x6e2   : > { %v1235_v15 = vpop.permute.xlu1 %1234 }
 0x6e5   : > { %v1233_v16 = vpop.permute.xlu0 %1232 }
 0x6e6   : > { %v1242_v17 = vsel %vm243_vm9, %v1231_v14, %v1233_v16  ;;  %v1243_v18 = vsel %vm243_vm9, %v1233_v16, %v1235_v15 }
 0x6e7   : > { %1256 = vmatprep.subr.bf16.mxu1 %v1243_v18 }
 0x6e8   : > { %1257 = vmatpush1.bf16.msra.mxu1 %v1242_v17 }
 0x6ea   : > { %v1241_v19 = vpop.permute.xlu0 %1240  ;;  %v1239_v20 = vpop.permute.xlu1 %1238 }
 0x6eb   : > { %v1245_v22 = vsel %vm243_vm9, %v1239_v20, %v1241_v19 }
 0x6ec   : > { %1258 = vmatprep.subr.bf16.mxu1 %v1245_v22 }
 0x6ee   : > { %v1237_v24 = vpop.permute.xlu1 %1236  ;;  %v1396_v28 = vpop.permute.xlu0 %1395 }
 0x6ef   : > { %v1244_v25 = vsel %vm243_vm9, %v1237_v24, %v1239_v20 }
 0x6f0   : > { %1259 = vmatpush1.bf16.msra.mxu1 %v1244_v25 }
 0x6f1   : > { %1325 = vmatprep.subr.bf16.mxu1 %v1192_v3 }
 0x6f2   : > { %v1398_v0 = vpop.permute.xlu1 %1397  ;;  %v1394_v30 = vpop.permute.xlu0 %1393 }
 0x6f3   : > { %2337 = vmatmul.mubr.msk.bf16.vlgmr.msra.gmra.mrb[8].mxu1 %vm252_vm10, %v2583_v27  ;;  %v1406_v1 = vsel %vm408_vm12, %v1396_v28, %v1398_v0  ;;  %v1405_v34 = vsel %vm408_vm12, %v1394_v30, %v1396_v28 }
 0x6f4   : > { %2342 = vmatpush1.bf16.msk.msra.mxu1 %vm2818_vm11, %v1185_v60  ;;  %1298 = vmatprep.mubr.bf16.mxu1 %v2666_v33 }
 0x6f5   : > { %1327 = vmatprep.subr.bf16.mxu1 %v1193_v10 }
 0x6f6   : > { %v1402_v31 = vpop.permute.xlu1 %1401  ;;  %v1404_v8 = vpop.permute.xlu0 %1403 }
 0x6f7   : > { %v1408_v37 = vsel %vm408_vm12, %v1402_v31, %v1404_v8 }
 0x6f8   : > { %2344 = vmatpush1.bf16.msk.msra.mxu1 %vm2818_vm11, %v1189_v4 }
 0x6f9   : > { %1419 = vmatprep.subr.bf16.mxu1 %v1406_v1 }
 0x6fa   : > { %v1400_v36 = vpop.permute.xlu1 %1399 }
 0x6fb   : > { %2338 = vmatmul.mubr.msk.bf16.gmra.mrb[12].mxu1 %vm252_vm10, %v2584_v7  ;;  %v1407_v39 = vsel %vm408_vm12, %v1400_v36, %v1402_v31  ;;  %v2589_v36 = vld [vmem:[%s3288_s1 + $0xd0] sm:$0xff]  }
 0x6fc   : > { %1357 = vmatprep.mubr.bf16.mxu1 %v2666_v33 }
 0x703   : > { %2345 = vmatmul.mubr.msk.bf16.vlgmr.msra.gmra.mrb[8].mxu1 %vm252_vm10, %v2585_v32 }
 0x704   : > { %1420 = vmatpush1.bf16.msra.mxu1 %v1405_v34  ;;  %1367 = vmatprep.mubr.bf16.mxu1 %v2666_v33 }
 0x705   : > { %1421 = vmatprep.subr.bf16.mxu1 %v1408_v37 }
 0x708   : > { %1422 = vmatpush1.bf16.msra.mxu1 %v1407_v39 }
 0x70b   : > { %2346 = vmatmul.mubr.msk.bf16.gmra.mrb[12].mxu1 %vm252_vm10, %v2586_v40  ;;  %v2590_v40 = vld [vmem:[%s3288_s1 + $0xd8] sm:$0xff]  }
 0x70c   : > { %1451 = vmatprep.mubr.bf16.mxu1 %v2666_v33 }
 0x713   : > { %2353 = vmatmul.mubr.msk.bf16.vlgmr.msra.gmra.mrb[8].mxu1 %vm252_vm10, %v2587_v42 }
 0x714   : > { %1461 = vmatprep.mubr.bf16.mxu1 %v2666_v33 }
 0x71b   : > { %2354 = vmatmul.mubr.msk.bf16.gmra.mrb[12].mxu1 %vm252_vm10, %v2588_v43 }
 0x71c   : > { %1956 = vmatprep.mubr.bf16.mxu1 %v2666_v33 }
 0x7e6   : > { %v1453_v12 = vpop.f32.mrb[8].mxu1 }
 0x7e7   : > { %v3075_v44 = vadd.f32 %v1453_v12, %v2922_v21  ;;  %v1455_v5 = vpop.f32.mrb[9].mxu1 }
 0x7e8   : > { %v3078_v45 = vadd.f32 %v1455_v5, %v2925_v23  ;;  %v1457_v46 = vpop.f32.mrb[10].mxu1  ;;  %v2591_v5 = vld [vmem:[%s3288_s1 + $0xc0] sm:$0xff]  }
 0x7e9   : > { %v1496_v13 = vmul.f32 0.2, %v3075_v44  ;;  %v3082_v47 = vadd.f32 %v1457_v46, %v2929_v26  ;;  %v1459_v48 = vpop.f32.mrb[11].mxu1  ;;  %vm1488_vm3 = vcmp.gt.f32.partialorder %v3075_v44, 0.0 }
 0x7ea   : > { %v1497_v49 = vmul.f32 0.2, %v3078_v45  ;;  %v3086_v51 = vadd.f32 %v1459_v48, %v2933_v29  ;;  %vm1489_vm5 = vcmp.gt.f32.partialorder %v3078_v45, 0.0 }
 0x7eb   : > { %v1498_v21 = vmul.f32 0.2, %v3082_v47  ;;  %vm1490_vm4 = vcmp.gt.f32.partialorder %v3082_v47, 0.0  ;;  %v1504_v26 = vsel %vm1488_vm3, %v3075_v44, %v1496_v13  ;;  %vm1744_vm3 = vcmask 900096  }
 0x7ec   : > { %v1499_v23 = vmul.f32 0.2, %v3086_v51  ;;  %vm1491_vm6 = vcmp.gt.f32.partialorder %v3086_v51, 0.0  ;;  %v1505_v29 = vsel %vm1489_vm5, %v3078_v45, %v1497_v49 }
 0x7ed   : > { %v1506_v52 = vsel %vm1490_vm4, %v3082_v47, %v1498_v21 }
 0x7ee   : > { %v1463_v53 = vpop.f32.mrb[12].mxu1  ;;  %v1512_v54 = vpack.c.bf16 %v1506_v52, %v1504_v26  ;;  %v1507_v55 = vsel %vm1491_vm6, %v3086_v51, %v1499_v23  ;;  %v2592_v23 = vld [vmem:[%s3288_s1 + $0xc8] sm:$0xff]   ;;  %v2593_v26 = vld [vmem:[%s3288_s1 + $0xe0] sm:$0xff]  }
 0x7ef   : > { %v3099_v56 = vadd.f32 %v1463_v53, %v2946_v35  ;;  %v1465_v57 = vpop.f32.mrb[13].mxu1  ;;  %v1513_v58 = vpack.c.bf16 %v1507_v55, %v1505_v29  ;;  %v2594_v52 = vld [vmem:[%s3288_s1 + $0xe8] sm:$0xff]  }
 0x7f0   : > { %v3102_v59 = vadd.f32 %v1465_v57, %v2949_v38  ;;  %1520 = vrot.lane.b32.xlu0 %v1512_v54, %s2672_s4  ;;  %v1467_v60 = vpop.f32.mrb[14].mxu1 }
 0x7f1   : > { %v1500_v61 = vmul.f32 0.2, %v3099_v56  ;;  %v3106_v62 = vadd.f32 %v1467_v60, %v2953_v41  ;;  %1522 = vrot.lane.b32.xlu1 %v1513_v58, %s2672_s4  ;;  %v1469_v63 = vpop.f32.mrb[15].mxu1  ;;  %vm1492_vm7 = vcmp.gt.f32.partialorder %v3099_v56, 0.0 }
 0x7f2   : > { %v1501_v3 = vmul.f32 0.2, %v3102_v59  ;;  %v3110_v35 = vadd.f32 %v1469_v63, %v2957_v2  ;;  %vm1493_vm14 = vcmp.gt.f32.partialorder %v3102_v59, 0.0 }
 0x7f3   : > { %v1502_v38 = vmul.f32 0.2, %v3106_v62  ;;  %vm1494_vm13 = vcmp.gt.f32.partialorder %v3106_v62, 0.0  ;;  %v1508_v41 = vsel %vm1492_vm7, %v3099_v56, %v1500_v61 }
 0x7f4   : > { %v1503_v4 = vmul.f32 0.2, %v3110_v35  ;;  %vm1495_vm15 = vcmp.gt.f32.partialorder %v3110_v35, 0.0  ;;  %v1509_v2 = vsel %vm1493_vm14, %v3102_v59, %v1501_v3 }
 0x7f5   : > { %v1510_v6 = vsel %vm1494_vm13, %v3106_v62, %v1502_v38 }
 0x7f6   : > { %v1514_v9 = vpack.c.bf16 %v1510_v6, %v1508_v41  ;;  %v1511_v10 = vsel %vm1495_vm15, %v3110_v35, %v1503_v4 }
 0x7f7   : > { %v1515_v11 = vpack.c.bf16 %v1511_v10, %v1509_v2 }
 0x7f8   : > { %1524 = vrot.lane.b32.xlu0 %v1514_v9, %s2672_s4 }
 0x7f9   : > { %1526 = vrot.lane.b32.xlu1 %v1515_v11, %s2672_s4 }
 0x862   : > { %v1521_v14 = vpop.permute.xlu0 %1520 }
 0x863   : > { %v1523_v15 = vpop.permute.xlu1 %1522  ;;  %v1535_v16 = vsel %vm1528_vm0, 0, %v1521_v14 }
 0x864   : > { %1568 = vrot.lane.b32.xlu0 %v1535_v16, %s2673_s5  ;;  %v1541_v17 = vsel %vm1528_vm0, %v1523_v15, 0  ;;  %v1529_v18 = vsel %vm1528_vm0, %v1521_v14, %v1523_v15 }
 0x865   : > { %1572 = vrot.lane.b32.xlu1 %v1541_v17, %s2673_s5 }
 0x868   : > { %1570 = vrot.lane.b32.xlu0 %v1529_v18, %s2673_s5 }
 0x86a   : > { %v1525_v19 = vpop.permute.xlu0 %1524 }
 0x86b   : > { %v1527_v20 = vpop.permute.xlu1 %1526  ;;  %v1538_v25 = vsel %vm1528_vm0, 0, %v1525_v19 }
 0x86c   : > { %v1543_v22 = vsel %vm1528_vm0, %v1527_v20, 0  ;;  %v1530_v24 = vsel %vm1528_vm0, %v1525_v19, %v1527_v20 }
 0x86d   : > { %1578 = vrot.lane.b32.xlu0 %v1543_v22, %s2673_s5  ;;  %1576 = vrot.lane.b32.xlu1 %v1530_v24, %s2673_s5 }
 0x871   : > { %1734 = vrot.lane.b32.xlu0 %v1529_v18, %s2674_s6  ;;  %1574 = vrot.lane.b32.xlu1 %v1538_v25, %s2673_s5 }
 0x875   : > { %1732 = vrot.lane.b32.xlu0 %v1535_v16, %s2674_s6  ;;  %1736 = vrot.lane.b32.xlu1 %v1541_v17, %s2674_s6 }
 0x879   : > { %1742 = vrot.lane.b32.xlu0 %v1543_v22, %s2674_s6  ;;  %1740 = vrot.lane.b32.xlu1 %v1530_v24, %s2674_s6 }
 0x87d   : > { %1738 = vrot.lane.b32.xlu1 %v1538_v25, %s2674_s6 }
 0x8d6   : > { %v1569_v27 = vpop.permute.xlu0 %1568 }
 0x8d7   : > { %v1573_v28 = vpop.permute.xlu1 %1572 }
 0x8da   : > { %v1571_v0 = vpop.permute.xlu0 %1570 }
 0x8db   : > { %v1581_v7 = vsel %vm1580_vm1, %v1569_v27, %v1571_v0  ;;  %v1582_v1 = vsel %vm1580_vm1, %v1571_v0, %v1573_v28 }
 0x8dc   : > { %1595 = vmatprep.subr.bf16.mxu0 %v1582_v1 }
 0x8dd   : > { %1596 = vmatpush1.bf16.msra.mxu0 %v1581_v7 }
 0x8df   : > { %v1579_v30 = vpop.permute.xlu0 %1578  ;;  %v1577_v31 = vpop.permute.xlu1 %1576 }
 0x8e0   : > { %v1584_v32 = vsel %vm1580_vm1, %v1577_v31, %v1579_v30 }
 0x8e1   : > { %1597 = vmatprep.subr.bf16.mxu0 %v1584_v32 }
 0x8e3   : > { %v1575_v8 = vpop.permute.xlu1 %1574  ;;  %v1735_v37 = vpop.permute.xlu0 %1734 }
 0x8e4   : > { %v1583_v34 = vsel %vm1580_vm1, %v1575_v8, %v1577_v31 }
 0x8e5   : > { %1598 = vmatpush1.bf16.msra.mxu0 %v1583_v34 }
 0x8e6   : > { %1664 = vmatprep.subr.bf16.mxu0 %v1529_v18 }
 0x8e7   : > { %v1737_v39 = vpop.permute.xlu1 %1736  ;;  %v1733_v43 = vpop.permute.xlu0 %1732 }
 0x8e8   : > { %2365 = vmatmul.mubr.msk.bf16.vlgmr.msra.gmra.mrb[16].mxu0 %vm252_vm10, %v2589_v36  ;;  %v1746_v42 = vsel %vm1744_vm3, %v1735_v37, %v1737_v39  ;;  %v1745_v13 = vsel %vm1744_vm3, %v1733_v43, %v1735_v37 }
 0x8e9   : > { %2370 = vmatpush1.bf16.msk.msra.mxu0 %vm2369_vm2, %v1521_v14  ;;  %1637 = vmatprep.mubr.bf16.mxu0 %v2666_v33 }
 0x8ea   : > { %1666 = vmatprep.subr.bf16.mxu0 %v1530_v24 }
 0x8eb   : > { %v1741_v12 = vpop.permute.xlu1 %1740  ;;  %v1743_v46 = vpop.permute.xlu0 %1742 }
 0x8ec   : > { %v1748_v49 = vsel %vm1744_vm3, %v1741_v12, %v1743_v46 }
 0x8ed   : > { %2372 = vmatpush1.bf16.msk.msra.mxu0 %vm2369_vm2, %v1525_v19 }
 0x8ee   : > { %1759 = vmatprep.subr.bf16.mxu0 %v1746_v42 }
 0x8ef   : > { %v1739_v48 = vpop.permute.xlu1 %1738 }
 0x8f0   : > { %2366 = vmatmul.mubr.msk.bf16.gmra.mrb[20].mxu0 %vm252_vm10, %v2590_v40  ;;  %v1747_v21 = vsel %vm1744_vm3, %v1739_v48, %v1741_v12  ;;  %v2595_v48 = vld [vmem:[%s3288_s1 + $0x100] sm:$0xff]  }
 0x8f1   : > { %1696 = vmatprep.mubr.bf16.mxu0 %v2666_v33 }
 0x8f8   : > { %2373 = vmatmul.mubr.msk.bf16.vlgmr.msra.gmra.mrb[16].mxu0 %vm252_vm10, %v2591_v5 }
 0x8f9   : > { %1760 = vmatpush1.bf16.msra.mxu0 %v1745_v13  ;;  %1706 = vmatprep.mubr.bf16.mxu0 %v2666_v33 }
 0x8fa   : > { %1761 = vmatprep.subr.bf16.mxu0 %v1748_v49 }
 0x8fd   : > { %1762 = vmatpush1.bf16.msra.mxu0 %v1747_v21 }
 0x900   : > { %2374 = vmatmul.mubr.msk.bf16.gmra.mrb[20].mxu0 %vm252_vm10, %v2592_v23  ;;  %v2596_v23 = vld [vmem:[%s3288_s1 + $0x108] sm:$0xff]  }
 0x901   : > { %1791 = vmatprep.mubr.bf16.mxu0 %v2666_v33 }
 0x908   : > { %2381 = vmatmul.mubr.msk.bf16.vlgmr.msra.gmra.mrb[16].mxu0 %vm252_vm10, %v2593_v26 }
 0x909   : > { %1801 = vmatprep.mubr.bf16.mxu0 %v2666_v33 }
 0x910   : > { %2382 = vmatmul.mubr.msk.bf16.gmra.mrb[20].mxu0 %vm252_vm10, %v2594_v52 }
 0x9db   : > { %v1793_v53 = vpop.f32.mrb[16].mxu0 }
 0x9dc   : > { %v1828_v54 = vmul.f32 0.2, %v1793_v53  ;;  %v1795_v29 = vpop.f32.mrb[17].mxu0  ;;  %vm1820_vm4 = vcmp.gt.f32.partialorder %v1793_v53, 0.0 }
 0x9dd   : > { %v1829_v55 = vmul.f32 0.2, %v1795_v29  ;;  %v1797_v57 = vpop.f32.mrb[18].mxu0  ;;  %vm1821_vm5 = vcmp.gt.f32.partialorder %v1795_v29, 0.0 }
 0x9de   : > { %vm1822_vm6 = vcmp.gt.f32.partialorder %v1797_v57, 0.0  ;;  %v1830_v58 = vmul.f32 0.2, %v1797_v57  ;;  %v1799_v60 = vpop.f32.mrb[19].mxu0  ;;  %v1836_v63 = vsel %vm1820_vm4, %v1793_v53, %v1828_v54  ;;  %v2597_v54 = vld [vmem:[%s3288_s1 + $0xf0] sm:$0xff]  }
 0x9df   : > { %vm1823_vm7 = vcmp.gt.f32.partialorder %v1799_v60, 0.0  ;;  %v1831_v61 = vmul.f32 0.2, %v1799_v60  ;;  %v1837_v38 = vsel %vm1821_vm5, %v1795_v29, %v1829_v55 }
 0x9e0   : > { %v1838_v3 = vsel %vm1822_vm6, %v1797_v57, %v1830_v58 }
 0x9e1   : > { %v1839_v4 = vsel %vm1823_vm7, %v1799_v60, %v1831_v61  ;;  %v1844_v41 = vpack.c.bf16 %v1838_v3, %v1836_v63  ;;  %v2598_v60 = vld [vmem:[%s3288_s1 + $0xf8] sm:$0xff]   ;;  %v2599_v61 = vld [vmem:[%s3288_s1 + $0x110] sm:$0xff]  }
 0x9e2   : > { %v1845_v6 = vpack.c.bf16 %v1839_v4, %v1837_v38  ;;  %v2600_v63 = vld [vmem:[%s3288_s1 + $0x118] sm:$0xff]  }
 0x9e3   : > { %1852 = vrot.lane.b32.xlu0 %v1844_v41, %s2665_s26  ;;  %v1803_v9 = vpop.f32.mrb[20].mxu0 }
 0x9e4   : > { %v1832_v2 = vmul.f32 0.2, %v1803_v9  ;;  %1854 = vrot.lane.b32.xlu1 %v1845_v6, %s2665_s26  ;;  %v1805_v10 = vpop.f32.mrb[21].mxu0  ;;  %vm1824_vm13 = vcmp.gt.f32.partialorder %v1803_v9, 0.0 }
 0x9e5   : > { %v1833_v11 = vmul.f32 0.2, %v1805_v10  ;;  %v1807_v14 = vpop.f32.mrb[22].mxu0  ;;  %vm1825_vm14 = vcmp.gt.f32.partialorder %v1805_v10, 0.0 }
 0x9e6   : > { %vm1826_vm15 = vcmp.gt.f32.partialorder %v1807_v14, 0.0  ;;  %v1834_v15 = vmul.f32 0.2, %v1807_v14  ;;  %v1809_v16 = vpop.f32.mrb[23].mxu0  ;;  %v1840_v18 = vsel %vm1824_vm13, %v1803_v9, %v1832_v2 }
 0x9e7   : > { %vm1827_vm0 = vcmp.gt.f32.partialorder %v1809_v16, 0.0  ;;  %v1835_v17 = vmul.f32 0.2, %v1809_v16  ;;  %v1841_v20 = vsel %vm1825_vm14, %v1805_v10, %v1833_v11 }
 0x9e8   : > { %v1842_v19 = vsel %vm1826_vm15, %v1807_v14, %v1834_v15 }
 0x9e9   : > { %v1843_v22 = vsel %vm1827_vm0, %v1809_v16, %v1835_v17  ;;  %v1846_v24 = vpack.c.bf16 %v1842_v19, %v1840_v18 }
 0x9ea   : > { %v1847_v25 = vpack.c.bf16 %v1843_v22, %v1841_v20 }
 0x9eb   : > { %1856 = vrot.lane.b32.xlu0 %v1846_v24, %s2665_s26 }
 0x9ec   : > { %1858 = vrot.lane.b32.xlu1 %v1847_v25, %s2665_s26  ;;  %s3239_s26 = scalar_lea.hbm %s3289_s2, %s2417_s24 }
 0xa55   : > { %v1853_v27 = vpop.permute.xlu0 %1852 }
 0xa56   : > { %v1855_v28 = vpop.permute.xlu1 %1854  ;;  %v1865_v0 = vsel %vm191_vm8, 0, %v1853_v27 }
 0xa57   : > { %1898 = vrot.lane.b32.xlu0 %v1865_v0, %s2667_s27  ;;  %v1871_v7 = vsel %vm191_vm8, %v1855_v28, 0  ;;  %v1860_v1 = vsel %vm191_vm8, %v1853_v27, %v1855_v28 }
 0xa58   : > { %1902 = vrot.lane.b32.xlu1 %v1871_v7, %s2667_s27 }
 0xa5b   : > { %1900 = vrot.lane.b32.xlu0 %v1860_v1, %s2667_s27 }
 0xa5d   : > { %v1857_v30 = vpop.permute.xlu0 %1856 }
 0xa5e   : > { %v1859_v31 = vpop.permute.xlu1 %1858  ;;  %v1868_v34 = vsel %vm191_vm8, 0, %v1857_v30 }
 0xa5f   : > { %v1873_v32 = vsel %vm191_vm8, %v1859_v31, 0  ;;  %v1861_v8 = vsel %vm191_vm8, %v1857_v30, %v1859_v31 }
 0xa60   : > { %1908 = vrot.lane.b32.xlu0 %v1873_v32, %s2667_s27  ;;  %1906 = vrot.lane.b32.xlu1 %v1861_v8, %s2667_s27 }
 0xa64   : > { %2063 = vrot.lane.b32.xlu0 %v1860_v1, %s2668_s28  ;;  %1904 = vrot.lane.b32.xlu1 %v1868_v34, %s2667_s27  ;;  %s2601_s27 = scalar_lea.vmem %s3241_s25, 1024 }
 0xa65   : > { %p2602_p11 = scmp.ne.s32.totalorder %s3241_s25, %s2601_s27 }
 0xa67   : > { %p2603_p12 = pnand %p2602_p11, %p2731_p5 }
 0xa68   : > { %2061 = vrot.lane.b32.xlu0 %v1865_v0, %s2668_s28  ;;  %2065 = vrot.lane.b32.xlu1 %v1871_v7, %s2668_s28 }
 0xa69   : > { %p2604_p13 = pneg %p2603_p12 }
 0xa6c   : > { %2071 = vrot.lane.b32.xlu0 %v1873_v32, %s2668_s28  ;;  %2069 = vrot.lane.b32.xlu1 %v1861_v8, %s2668_s28 }
 0xa70   : > { %2067 = vrot.lane.b32.xlu1 %v1868_v34, %s2668_s28  ;;  %s2675_s28 = smov [#allocation2]  }
 0xa71   : > { %s2605_s3 = sshll.u32 %s2675_s28, 4  ;;  %s2606_s3 = int_to_ptr.vmem [resolvable:$false] %s2605_s3 }
 0xa72   : > { %s2607_s4 = scalar_lea.vmem %s2606_s3, 2048  ;;  %p2608_p0 = scmp.lt.s32.totalorder %s3241_s25, %s2606_s3 }
 0xa73   : > { %p2609_p1 = scmp.lt.s32.totalorder %s2607_s4, %s2601_s27 }
 0xa75   : > { %p2610_p2 = por %p2609_p1, %p2608_p0 }
 0xa77   : > { %p2611_p3 = pnand %p2610_p2, %p2604_p13 }
 0xac9   : > { %v1899_v36 = vpop.permute.xlu0 %1898 }
 0xaca   : > { %v1903_v37 = vpop.permute.xlu1 %1902 }
 0xacd   : > { %v1901_v39 = vpop.permute.xlu0 %1900 }
 0xace   : > { %v1910_v40 = vsel %vm243_vm9, %v1899_v36, %v1901_v39  ;;  %v1911_v42 = vsel %vm243_vm9, %v1901_v39, %v1903_v37 }
 0xacf   : > { %1924 = vmatprep.subr.bf16.mxu1 %v1911_v42 }
 0xad0   : > { %1925 = vmatpush1.bf16.msra.mxu1 %v1910_v40 }
 0xad2   : > { %v1909_v43 = vpop.permute.xlu0 %1908  ;;  %v1907_v12 = vpop.permute.xlu1 %1906 }
 0xad3   : > { %v1913_v5 = vsel %vm243_vm9, %v1907_v12, %v1909_v43 }
 0xad4   : > { %1926 = vmatprep.subr.bf16.mxu1 %v1913_v5 }
 0xad6   : > { %v1905_v46 = vpop.permute.xlu1 %1904  ;;  %v2064_v49 = vpop.permute.xlu0 %2063 }
 0xad7   : > { %v1912_v13 = vsel %vm243_vm9, %v1905_v46, %v1907_v12 }
 0xad8   : > { %1927 = vmatpush1.bf16.msra.mxu1 %v1912_v13 }
 0xad9   : > { %1993 = vmatprep.subr.bf16.mxu1 %v1860_v1 }
 0xada   : > { %v2066_v21 = vpop.permute.xlu1 %2065  ;;  %v2062_v52 = vpop.permute.xlu0 %2061 }
 0xadb   : > { %2393 = vmatmul.mubr.msk.bf16.vlgmr.msra.gmra.mrb[16].mxu1 %vm252_vm10, %v2595_v48  ;;  %v2074_v26 = vsel %vm408_vm12, %v2064_v49, %v2066_v21  ;;  %v2073_v55 = vsel %vm408_vm12, %v2062_v52, %v2064_v49 }
 0xadc   : > { %2398 = vmatpush1.bf16.msk.msra.mxu1 %vm2818_vm11, %v1853_v27  ;;  %1966 = vmatprep.mubr.bf16.mxu1 %v2666_v33 }
 0xadd   : > { %1995 = vmatprep.subr.bf16.mxu1 %v1861_v8 }
 0xade   : > { %v2070_v53 = vpop.permute.xlu1 %2069  ;;  %v2072_v29 = vpop.permute.xlu0 %2071 }
 0xadf   : > { %v2076_v57 = vsel %vm408_vm12, %v2070_v53, %v2072_v29 }
 0xae0   : > { %2400 = vmatpush1.bf16.msk.msra.mxu1 %vm2818_vm11, %v1857_v30 }
 0xae1   : > { %2087 = vmatprep.subr.bf16.mxu1 %v2074_v26 }
 0xae2   : > { %v2068_v50 = vpop.permute.xlu1 %2067 }
 0xae3   : > { %2394 = vmatmul.mubr.msk.bf16.gmra.mrb[20].mxu1 %vm252_vm10, %v2596_v23  ;;  %v2075_v58 = vsel %vm408_vm12, %v2068_v50, %v2070_v53 }
 0xae4   : > { %2025 = vmatprep.mubr.bf16.mxu1 %v2666_v33 }
 0xaeb   : > { %2401 = vmatmul.mubr.msk.bf16.vlgmr.msra.gmra.mrb[16].mxu1 %vm252_vm10, %v2597_v54 }
 0xaec   : > { %2088 = vmatpush1.bf16.msra.mxu1 %v2073_v55  ;;  %2035 = vmatprep.mubr.bf16.mxu1 %v2666_v33 }
 0xaed   : > { %2089 = vmatprep.subr.bf16.mxu1 %v2076_v57 }
 0xaf0   : > { %2090 = vmatpush1.bf16.msra.mxu1 %v2075_v58 }
 0xaf3   : > { %2402 = vmatmul.mubr.msk.bf16.gmra.mrb[20].mxu1 %vm252_vm10, %v2598_v60 }
 0xaf4   : > { %2119 = vmatprep.mubr.bf16.mxu1 %v2666_v33 }
 0xafb   : > { %2409 = vmatmul.mubr.msk.bf16.vlgmr.msra.gmra.mrb[16].mxu1 %vm252_vm10, %v2599_v61 }
 0xafc   : > { %2129 = vmatprep.mubr.bf16.mxu1 %v2666_v33 }
 0xb03   : > { %2410 = vmatmul.mubr.msk.bf16.gmra.mrb[20].mxu1 %vm252_vm10, %v2600_v63 }
 0xbce   : > { %v2121_v3 = vpop.f32.mrb[16].mxu1 }
 0xbcf   : > { %v2148_v38 = vadd.f32 %v2121_v3, %v3075_v44  ;;  %v2123_v4 = vpop.f32.mrb[17].mxu1 }
 0xbd0   : > { %v2149_v41 = vadd.f32 %v2123_v4, %v3078_v45  ;;  %v2125_v6 = vpop.f32.mrb[18].mxu1 }
 0xbd1   : > { %2156 = vst [vmem:[%s136_s23] sm:$0xff] %v2148_v38  ;;  %v2150_v33 = vadd.f32 %v2125_v6, %v3082_v47  ;;  %v2127_v9 = vpop.f32.mrb[19].mxu1 }
 0xbd2   : > { %2157 = vst [vmem:[%s136_s23 + $0x8] sm:$0xff] %v2149_v41  ;;  %v2151_v2 = vadd.f32 %v2127_v9, %v3086_v51 }
 0xbd3   : > { %2158 = vst [vmem:[%s136_s23 + $0x10] sm:$0xff] %v2150_v33 }
 0xbd4   : > { %2159 = vst [vmem:[%s136_s23 + $0x18] sm:$0xff] %v2151_v2 }
 0xbd6   : > { %v2131_v10 = vpop.f32.mrb[20].mxu1 }
 0xbd7   : > { %v2152_v44 = vadd.f32 %v2131_v10, %v3099_v56  ;;  %v2133_v11 = vpop.f32.mrb[21].mxu1 }
 0xbd8   : > { %v2153_v45 = vadd.f32 %v2133_v11, %v3102_v59  ;;  %v2135_v14 = vpop.f32.mrb[22].mxu1 }
 0xbd9   : > { %2160 = vst [vmem:[%s136_s23 + $0x20] sm:$0xff] %v2152_v44  ;;  %v2154_v47 = vadd.f32 %v2135_v14, %v3106_v62  ;;  %v2137_v15 = vpop.f32.mrb[23].mxu1 }
 0xbda   : > { %2161 = vst [vmem:[%s136_s23 + $0x28] sm:$0xff] %v2153_v45  ;;  %v2155_v51 = vadd.f32 %v2137_v15, %v3110_v35 }
 0xbdb   : > { %2162 = vst [vmem:[%s136_s23 + $0x30] sm:$0xff] %v2154_v47 }
 0xbdc   : > { %2163 = vst [vmem:[%s136_s23 + $0x38] sm:$0xff] %v2155_v51 }
 0xbdd   : > { %2614 = shalt.err (!%p2611_p3)
}
 0xbde   : > { %s2615_s5 = scalar_lea.hbm %s3239_s26, 1024  ;;  %s2619_s8 = scalar_lea.hbm %s3289_s2, 2048 }
 0xbdf   : > { %p2616_p4 = scmp.ne.s32.totalorder %s3239_s26, %s2615_s5  ;;  %p2620_p9 = scmp.lt.u32.totalorder %s3239_s26, %s3289_s2 }
 0xbe0   : > { %p2621_p10 = scmp.lt.u32.totalorder %s2619_s8, %s2615_s5  ;;  %p2623_p12 = scmp.lt.u32.totalorder %s2615_s5, %s3239_s26 }
 0xbe1   : > { %p2617_p7 = pnand %p2616_p4, %p2731_p5 }
 0xbe2   : > { %p2622_p11 = por %p2621_p10, %p2620_p9 }
 0xbe3   : > { %p2618_p8 = pneg %p2617_p7 }
 0xbe4   : > { %p2624_p13 = por %p2623_p12, %p2622_p11 }
 0xbe6   : > { %p2625_p0 = pnand %p2624_p13, %p2618_p8 }
 0xbe8   : > { %2628 = shalt.err (!%p2625_p0)
}
 0xbe9   : > { %s2676_s17 = smov 256   ;;  %s2677_s21 = smov 16  }
 0xbea   : > { %2514 = dma.vmem_to_hbm [thread:$0]  (%p2731_p5), %s3241_s25, 1024, %s3239_s26, %s3246_s13, %s2676_s17, %s2676_s17, %s2677_s21  }
 0xbeb PF: > { %p2520_p1 = scmp.ge.s32.totalorder %s2663_s12, 2  ;;  %s2193_s22 = sand.u32 1, %s2651_s9  }
 0xbec   : > { %s2194_s23 = scalar_lea.sflag [#allocation3], %s2193_s22 }
 0xbed   : > { %p2517_p2 = pnand %p2520_p1, %p2735_p6 }
 0xbef   : > { %2646 = dma.done.wait (!%p2517_p2), %s2194_s23, 1024  }
 0xbf0   : > { %2648 = vsyncadd (!%p2517_p2), %s2194_s23, 4294966272  ;;  %p12_p3 = scmp.ge.s32.totalorder %s2718_s15, 4   ;;  %s3294_s9 = smov %s2655_s10 }
 0xbf1   : > { %s3295_s10 = smov %s2659_s11  ;;  %s3296_s11 = smov %s2729_s18 }
 0xbf2   : > { %s3297_s12 = smov %s2718_s15  ;;  %14 = sbr.rel (!%p12_p3) target bundleno = 3 (0x3), region = 80 }
 0xbf9   :  { %2199 = vsyncpa [#allocation3], 1 }
 0xbfa   :  { %2201 = vsyncpa [#allocation3 + $0x1], 1 }

</bundles_post_ra>
